<compile_context>
chip_gen: v6e
topology: v6e:2x2x1
jax: 0.10.0
libtpu: 0.0.40
codegen_flags: <defaults>
</compile_context>

<pallas_src>
import numpy as np
import jax
import jax.numpy as jnp
from jax.experimental import pallas as pl
from jax.experimental.pallas import tpu as pltpu

LANE = 128
COUTS = (32, 32, 16)          # conv1 / conv2 / conv3 output channels

# geometry for the (4, 16, 16) encoder (spatial 16 -> 8 -> 4 -> 2)
_S1, _S2, _S3 = 256, 64, 16                 # input spatial sizes per layer
_P1, _P2, _P3 = 64, 16, 16                  # output-position rows per tap (P3 padded 4 -> 16)
_R1, _R2, _R3 = 9 * _P1, 9 * _P2, 9 * _P3   # 576, 144, 144 selector rows
_SEL_ROWS = _R1 + _R2 + _R3                 # 864


# ------------------------------ fused kernel ---------------------------------
def _elu(v):
    # exact F.elu (alpha=1); exp on the clamped arg keeps the untaken branch overflow-safe
    return jnp.where(v > 0.0, v, jnp.exp(jnp.minimum(v, 0.0)) - 1.0)


def _encoder_kernel(x_ref, sel_ref, w1_ref, w2_ref, w3t_ref, b_ref, o_ref):
    bf16, f32 = jnp.bfloat16, jnp.float32

    # ---------------- layer 1: 16x16x4 -> 8x8x32 ----------------
    x_bf = x_ref[...].astype(bf16)                                           # (4, 256)
    sel1 = sel_ref[0:_R1, :]                                                 # (576, 256)
    # stacked tap gather; NCHW->NHWC handled by contracting against x.T
    g1 = jnp.dot(sel1, x_bf.T, preferred_element_type=f32).astype(bf16)      # (576, 4)
    # 9 per-tap weight matmuls (K = Cin = 4) into 3 independent partial accumulators
    acc = [jnp.zeros((_P1, LANE), f32) for _ in range(3)]
    for t in range(9):
        acc[t % 3] = acc[t % 3] + jnp.dot(
            g1[t * _P1:(t + 1) * _P1, :], w1_ref[t], preferred_element_type=f32)
    y1 = _elu((acc[0] + acc[1]) + (acc[2] + b_ref[0:1, :]))                  # (64, 128) f32

    # ---------------- layer 2: 8x8x32 -> 4x4x32 ----------------
    y1_bf = y1.astype(bf16)
    sel2 = sel_ref[_R1:_R1 + _R2, 0:_S2]                                     # (144, 64)
    g2 = jnp.dot(sel2, y1_bf, preferred_element_type=f32).astype(bf16)       # (144, 128)
    im2 = jnp.concatenate(
        [g2[t * _P2:(t + 1) * _P2, :] for t in range(9)], axis=1)            # (16, 1152)
    y2 = _elu(jnp.dot(im2, w2_ref[...], preferred_element_type=f32)
              + b_ref[1:2, :])                                               # (16, 128) f32
    # b2[127] == 1 seeds the constant channel y2[:, 127] == 1 that carries bias3.

    # -------- layer 3: 4x4x32 -> 2x2x16, emitted channel-major --------
    y2_bf = y2.astype(bf16)
    sel3 = sel_ref[_R1 + _R2:_SEL_ROWS, 0:_S3]                               # (144, 16)
    g3 = jnp.dot(sel3, y2_bf, preferred_element_type=f32).astype(bf16)       # (144, 128)
    im3 = jnp.concatenate(
        [g3[t * _P3:(t + 1) * _P3, :] for t in range(9)], axis=1)            # (16, 1152)
    # transposed weight matmul -> (Cout, positions): already in torch (c, oh, ow) order;
    # bias3 arrives through the constant-one channel baked into w3t.
    y3t = _elu(jnp.dot(w3t_ref[...], im3.T, preferred_element_type=f32))     # (16, 16)
    o_ref[...] = y3t[:, 0:4]                                                 # (16, 4)


# ------------------------------ prep (hoisted) --------------------------------
def _make_selector(H, W, p_pad):
    """One-hot gather operator for conv(k=3, s=2, p=1); rows are tap-major (t*p_pad + p)."""
    OH, OW = H // 2, W // 2
    sel = np.zeros((9 * p_pad, H * W), np.float32)
    for p in range(OH * OW):
        oh, ow = divmod(p, OW)
        for t in range(9):
            kh, kw = divmod(t, 3)
            i, j = 2 * oh - 1 + kh, 2 * ow - 1 + kw
            if 0 <= i < H and 0 <= j < W:
                sel[t * p_pad + p, i * W + j] = 1.0
    return sel


def _make_packed_selectors():
    pack = np.zeros((_SEL_ROWS, _S1), np.float32)
    pack[0:_R1, :_S1] = _make_selector(16, 16, _P1)
    pack[_R1:_R1 + _R2, :_S2] = _make_selector(8, 8, _P2)
    pack[_R1 + _R2:_SEL_ROWS, :_S3] = _make_selector(4, 4, _P3)
    return jnp.asarray(pack, jnp.bfloat16)


def init_params(key, in_channels):
    ks = jax.random.split(key, 6)

    def w_init(k, shape):
        fan_in = shape[1] * shape[2] * shape[3]
        return jax.random.normal(k, shape, jnp.float32) / jnp.sqrt(fan_in)

    return {
        "w1": w_init(ks[0], (COUTS[0], in_channels, 3, 3)),
        "b1": 0.01 * jax.random.normal(ks[1], (COUTS[0],), jnp.float32),
        "w2": w_init(ks[2], (COUTS[1], COUTS[0], 3, 3)),
        "b2": 0.01 * jax.random.normal(ks[3], (COUTS[1],), jnp.float32),
        "w3": w_init(ks[4], (COUTS[2], COUTS[1], 3, 3)),
        "b3": 0.01 * jax.random.normal(ks[5], (COUTS[2],), jnp.float32),
    }


def prep_params(params):
    """One-time prep: tap-stacked, lane-padded bf16 weights + packed biases + selectors."""
    def tapify(w):                                  # (Co, Ci, 3, 3) -> (9, Ci, Co), t = kh*3+kw
        co, ci = w.shape[0], w.shape[1]
        return jnp.transpose(w, (2, 3, 1, 0)).reshape(9, ci, co)

    # layer 1: per-tap (9, Cin, 128)
    w1 = tapify(params["w1"])                                               # (9, 4, 32)
    w1t = jnp.pad(w1, ((0, 0), (0, 0), (0, LANE - w1.shape[2])))            # (9, 4, 128)

    # layer 2: tap-stacked (9*128, 128)
    w2 = tapify(params["w2"])                                               # (9, 32, 32)
    w2s = jnp.pad(w2, ((0, 0), (0, LANE - w2.shape[1]), (0, LANE - w2.shape[2])))
    w2s = w2s.reshape(9 * LANE, LANE)

    # layer 3: tap-stacked + transposed (16, 9*128); bias3 folded into the constant-one
    # channel (center tap = 4, input channel 127)
    w3 = tapify(params["w3"])                                               # (9, 32, 16)
    w3p = jnp.pad(w3, ((0, 0), (0, LANE - w3.shape[1]), (0, 0)))            # (9, 128, 16)
    w3p = w3p.at[4, LANE - 1, :].set(params["b3"])
    w3t = w3p.reshape(9 * LANE, COUTS[2]).T                                 # (16, 1152)

    b12 = np.zeros((2, LANE), np.float32)
    b12[0, :COUTS[0]] = np.asarray(params["b1"])
    b12[1, :COUTS[1]] = np.asarray(params["b2"])
    b12[1, LANE - 1] = 1.0                                                  # seeds y2[:,127]==1

    return {
        "sel": _make_packed_selectors(),
        "w1": w1t.astype(jnp.bfloat16),
        "w2": w2s.astype(jnp.bfloat16),
        "w3t": jnp.asarray(w3t, jnp.bfloat16),
        "b12": jnp.asarray(b12, jnp.float32),
    }


# ------------------------------ forward wrapper --------------------------------
def make_feature_encoder(input_shape, key):
    c_in, h0, w0 = input_shape
    assert (c_in, h0, w0) == (4, 16, 16), "demo kernel is specialized to (4, 16, 16)"
    params = init_params(key, c_in)
    pp = prep_params(params)

    encoder = pl.pallas_call(
        _encoder_kernel,
        out_shape=jax.ShapeDtypeStruct((COUTS[2], 4), jnp.float32),
        in_specs=[pl.BlockSpec(memory_space=pltpu.MemorySpace.VMEM)] * 6,
        out_specs=pl.BlockSpec(memory_space=pltpu.MemorySpace.VMEM),
        # TODO(synk): for batch > 1 or larger feature maps, add a "parallel" grid axis
        # (2 TCs on v7x) and switch the dense selectors to strided-DMA im2col.
    )

    @jax.jit
    def forward(x_nchw):
        # torch forward ends with x.view(1, -1) => effective batch 1.
        x = x_nchw.reshape(c_in, h0 * w0)        # free bitcast of the NCHW input
        y = encoder(x, pp["sel"], pp["w1"], pp["w2"], pp["w3t"], pp["b12"])
        return y.reshape(1, -1)                  # free bitcast: already (c, oh, ow) order

    return forward, params


# ------------------------------ pure-JAX reference ------------------------------
def reference_forward(x_nchw, params):
    def conv(x, w, b):
        y = jax.lax.conv_general_dilated(
            x, w, window_strides=(2, 2), padding=((1, 1), (1, 1)),
            dimension_numbers=("NCHW", "OIHW", "NCHW"))
        return jax.nn.elu(y + b[None, :, None, None])

    y = conv(x_nchw, params["w1"], params["b1"])
    y = conv(y, params["w2"], params["b2"])
    y = conv(y, params["w3"], params["b3"])
    return y.reshape(1, -1)


if __name__ == "__main__":
    key = jax.random.PRNGKey(0)
    k_x, k_p = jax.random.split(key)

    input_shape = (4, 16, 16)                    # (C, H, W)
    x = jax.random.normal(k_x, (1, *input_shape), jnp.float32)

    forward, params = make_feature_encoder(input_shape, k_p)
    out = jax.block_until_ready(forward(x))

    # conv chain: 16 -> 8 -> 4 -> 2 spatial, 16 channels => (1, 16 * 2 * 2) = (1, 64)
    assert out.shape == (1, 64), out.shape
    assert bool(jnp.all(jnp.isfinite(out)))

    # Cross-check against the XLA conv reference (bf16 MXU operands => loose tolerance).
    ref = jax.block_until_ready(reference_forward(x, params))
    max_err = float(jnp.max(jnp.abs(out - ref)))
    assert max_err < 0.1, max_err

    print("KERNEL_OK")
</pallas_src>

<mosaic_0001>
module attributes {stable_mosaic.version = 11 : i64} {
  func.func @_encoder_kernel(%arg0: memref<4x256xf32, #tpu.memory_space<vmem>>, %arg1: memref<864x256xbf16, #tpu.memory_space<vmem>>, %arg2: memref<9x4x128xbf16, #tpu.memory_space<vmem>>, %arg3: memref<1152x128xbf16, #tpu.memory_space<vmem>>, %arg4: memref<16x1152xbf16, #tpu.memory_space<vmem>>, %arg5: memref<2x128xf32, #tpu.memory_space<vmem>>, %arg6: memref<16x4xf32, #tpu.memory_space<vmem>>) attributes {dimension_semantics = [], scalar_prefetch = 0 : i64, scratch_operands = 0 : i64, tpu.core_type = #tpu.core_type<tc>} {
    %c0 = arith.constant 0 : index
    %c0_0 = arith.constant 0 : index
    %0 = vector.load %arg0[%c0, %c0_0] : memref<4x256xf32, #tpu.memory_space<vmem>>, vector<4x256xf32>
    %1 = arith.truncf %0 : vector<4x256xf32> to vector<4x256xbf16>
    %c0_1 = arith.constant 0 : index
    %c0_2 = arith.constant 0 : index
    %2 = vector.load %arg1[%c0_1, %c0_2] : memref<864x256xbf16, #tpu.memory_space<vmem>>, vector<576x256xbf16>
    %3 = tpu.transpose %1, [1, 0] : vector<4x256xbf16> -> vector<256x4xbf16>
    %cst = arith.constant dense<0.000000e+00> : vector<576x4xf32>
    %4 = tpu.matmul %2, %3, %cst {dimension_numbers = #tpu.dot_dimension_numbers<[1], [0], [0], [1], [0, 0, 1, 1], [], []>} : vector<576x256xbf16>, vector<256x4xbf16>, vector<576x4xf32> -> vector<576x4xf32>
    %5 = arith.truncf %4 : vector<576x4xf32> to vector<576x4xbf16>
    %cst_3 = arith.constant 0.000000e+00 : f32
    %6 = vector.broadcast %cst_3 : f32 to vector<64x128xf32>
    %cst_4 = arith.constant 0.000000e+00 : f32
    %7 = vector.broadcast %cst_4 : f32 to vector<64x128xf32>
    %cst_5 = arith.constant 0.000000e+00 : f32
    %8 = vector.broadcast %cst_5 : f32 to vector<64x128xf32>
    %9 = vector.extract_strided_slice %5 {offsets = [0, 0], sizes = [64, 4], strides = [1, 1]} : vector<576x4xbf16> to vector<64x4xbf16>
    %c0_6 = arith.constant 0 : index
    %c0_7 = arith.constant 0 : index
    %c0_8 = arith.constant 0 : index
    %10 = vector.load %arg2[%c0_6, %c0_7, %c0_8] : memref<9x4x128xbf16, #tpu.memory_space<vmem>>, vector<1x4x128xbf16>
    %11 = vector.shape_cast %10 : vector<1x4x128xbf16> to vector<4x128xbf16>
    %cst_9 = arith.constant dense<0.000000e+00> : vector<64x128xf32>
    %12 = tpu.matmul %9, %11, %cst_9 {dimension_numbers = #tpu.dot_dimension_numbers<[1], [0], [0], [1], [0, 0, 1, 1], [], []>} : vector<64x4xbf16>, vector<4x128xbf16>, vector<64x128xf32> -> vector<64x128xf32>
    %13 = arith.addf %6, %12 : vector<64x128xf32>
    %14 = vector.extract_strided_slice %5 {offsets = [64, 0], sizes = [64, 4], strides = [1, 1]} : vector<576x4xbf16> to vector<64x4xbf16>
    %c1 = arith.constant 1 : index
    %c0_10 = arith.constant 0 : index
    %c0_11 = arith.constant 0 : index
    %15 = vector.load %arg2[%c1, %c0_10, %c0_11] : memref<9x4x128xbf16, #tpu.memory_space<vmem>>, vector<1x4x128xbf16>
    %16 = vector.shape_cast %15 : vector<1x4x128xbf16> to vector<4x128xbf16>
    %cst_12 = arith.constant dense<0.000000e+00> : vector<64x128xf32>
    %17 = tpu.matmul %14, %16, %cst_12 {dimension_numbers = #tpu.dot_dimension_numbers<[1], [0], [0], [1], [0, 0, 1, 1], [], []>} : vector<64x4xbf16>, vector<4x128xbf16>, vector<64x128xf32> -> vector<64x128xf32>
    %18 = arith.addf %7, %17 : vector<64x128xf32>
    %19 = vector.extract_strided_slice %5 {offsets = [128, 0], sizes = [64, 4], strides = [1, 1]} : vector<576x4xbf16> to vector<64x4xbf16>
    %c2 = arith.constant 2 : index
    %c0_13 = arith.constant 0 : index
    %c0_14 = arith.constant 0 : index
    %20 = vector.load %arg2[%c2, %c0_13, %c0_14] : memref<9x4x128xbf16, #tpu.memory_space<vmem>>, vector<1x4x128xbf16>
    %21 = vector.shape_cast %20 : vector<1x4x128xbf16> to vector<4x128xbf16>
    %cst_15 = arith.constant dense<0.000000e+00> : vector<64x128xf32>
    %22 = tpu.matmul %19, %21, %cst_15 {dimension_numbers = #tpu.dot_dimension_numbers<[1], [0], [0], [1], [0, 0, 1, 1], [], []>} : vector<64x4xbf16>, vector<4x128xbf16>, vector<64x128xf32> -> vector<64x128xf32>
    %23 = arith.addf %8, %22 : vector<64x128xf32>
    %24 = vector.extract_strided_slice %5 {offsets = [192, 0], sizes = [64, 4], strides = [1, 1]} : vector<576x4xbf16> to vector<64x4xbf16>
    %c3 = arith.constant 3 : index
    %c0_16 = arith.constant 0 : index
    %c0_17 = arith.constant 0 : index
    %25 = vector.load %arg2[%c3, %c0_16, %c0_17] : memref<9x4x128xbf16, #tpu.memory_space<vmem>>, vector<1x4x128xbf16>
    %26 = vector.shape_cast %25 : vector<1x4x128xbf16> to vector<4x128xbf16>
    %cst_18 = arith.constant dense<0.000000e+00> : vector<64x128xf32>
    %27 = tpu.matmul %24, %26, %cst_18 {dimension_numbers = #tpu.dot_dimension_numbers<[1], [0], [0], [1], [0, 0, 1, 1], [], []>} : vector<64x4xbf16>, vector<4x128xbf16>, vector<64x128xf32> -> vector<64x128xf32>
    %28 = arith.addf %13, %27 : vector<64x128xf32>
    %29 = vector.extract_strided_slice %5 {offsets = [256, 0], sizes = [64, 4], strides = [1, 1]} : vector<576x4xbf16> to vector<64x4xbf16>
    %c4 = arith.constant 4 : index
    %c0_19 = arith.constant 0 : index
    %c0_20 = arith.constant 0 : index
    %30 = vector.load %arg2[%c4, %c0_19, %c0_20] : memref<9x4x128xbf16, #tpu.memory_space<vmem>>, vector<1x4x128xbf16>
    %31 = vector.shape_cast %30 : vector<1x4x128xbf16> to vector<4x128xbf16>
    %cst_21 = arith.constant dense<0.000000e+00> : vector<64x128xf32>
    %32 = tpu.matmul %29, %31, %cst_21 {dimension_numbers = #tpu.dot_dimension_numbers<[1], [0], [0], [1], [0, 0, 1, 1], [], []>} : vector<64x4xbf16>, vector<4x128xbf16>, vector<64x128xf32> -> vector<64x128xf32>
    %33 = arith.addf %18, %32 : vector<64x128xf32>
    %34 = vector.extract_strided_slice %5 {offsets = [320, 0], sizes = [64, 4], strides = [1, 1]} : vector<576x4xbf16> to vector<64x4xbf16>
    %c5 = arith.constant 5 : index
    %c0_22 = arith.constant 0 : index
    %c0_23 = arith.constant 0 : index
    %35 = vector.load %arg2[%c5, %c0_22, %c0_23] : memref<9x4x128xbf16, #tpu.memory_space<vmem>>, vector<1x4x128xbf16>
    %36 = vector.shape_cast %35 : vector<1x4x128xbf16> to vector<4x128xbf16>
    %cst_24 = arith.constant dense<0.000000e+00> : vector<64x128xf32>
    %37 = tpu.matmul %34, %36, %cst_24 {dimension_numbers = #tpu.dot_dimension_numbers<[1], [0], [0], [1], [0, 0, 1, 1], [], []>} : vector<64x4xbf16>, vector<4x128xbf16>, vector<64x128xf32> -> vector<64x128xf32>
    %38 = arith.addf %23, %37 : vector<64x128xf32>
    %39 = vector.extract_strided_slice %5 {offsets = [384, 0], sizes = [64, 4], strides = [1, 1]} : vector<576x4xbf16> to vector<64x4xbf16>
    %c6 = arith.constant 6 : index
    %c0_25 = arith.constant 0 : index
    %c0_26 = arith.constant 0 : index
    %40 = vector.load %arg2[%c6, %c0_25, %c0_26] : memref<9x4x128xbf16, #tpu.memory_space<vmem>>, vector<1x4x128xbf16>
    %41 = vector.shape_cast %40 : vector<1x4x128xbf16> to vector<4x128xbf16>
    %cst_27 = arith.constant dense<0.000000e+00> : vector<64x128xf32>
    %42 = tpu.matmul %39, %41, %cst_27 {dimension_numbers = #tpu.dot_dimension_numbers<[1], [0], [0], [1], [0, 0, 1, 1], [], []>} : vector<64x4xbf16>, vector<4x128xbf16>, vector<64x128xf32> -> vector<64x128xf32>
    %43 = arith.addf %28, %42 : vector<64x128xf32>
    %44 = vector.extract_strided_slice %5 {offsets = [448, 0], sizes = [64, 4], strides = [1, 1]} : vector<576x4xbf16> to vector<64x4xbf16>
    %c7 = arith.constant 7 : index
    %c0_28 = arith.constant 0 : index
    %c0_29 = arith.constant 0 : index
    %45 = vector.load %arg2[%c7, %c0_28, %c0_29] : memref<9x4x128xbf16, #tpu.memory_space<vmem>>, vector<1x4x128xbf16>
    %46 = vector.shape_cast %45 : vector<1x4x128xbf16> to vector<4x128xbf16>
    %cst_30 = arith.constant dense<0.000000e+00> : vector<64x128xf32>
    %47 = tpu.matmul %44, %46, %cst_30 {dimension_numbers = #tpu.dot_dimension_numbers<[1], [0], [0], [1], [0, 0, 1, 1], [], []>} : vector<64x4xbf16>, vector<4x128xbf16>, vector<64x128xf32> -> vector<64x128xf32>
    %48 = arith.addf %33, %47 : vector<64x128xf32>
    %49 = vector.extract_strided_slice %5 {offsets = [512, 0], sizes = [64, 4], strides = [1, 1]} : vector<576x4xbf16> to vector<64x4xbf16>
    %c8 = arith.constant 8 : index
    %c0_31 = arith.constant 0 : index
    %c0_32 = arith.constant 0 : index
    %50 = vector.load %arg2[%c8, %c0_31, %c0_32] : memref<9x4x128xbf16, #tpu.memory_space<vmem>>, vector<1x4x128xbf16>
    %51 = vector.shape_cast %50 : vector<1x4x128xbf16> to vector<4x128xbf16>
    %cst_33 = arith.constant dense<0.000000e+00> : vector<64x128xf32>
    %52 = tpu.matmul %49, %51, %cst_33 {dimension_numbers = #tpu.dot_dimension_numbers<[1], [0], [0], [1], [0, 0, 1, 1], [], []>} : vector<64x4xbf16>, vector<4x128xbf16>, vector<64x128xf32> -> vector<64x128xf32>
    %53 = arith.addf %38, %52 : vector<64x128xf32>
    %54 = arith.addf %43, %48 : vector<64x128xf32>
    %c0_34 = arith.constant 0 : index
    %c0_35 = arith.constant 0 : index
    %55 = vector.load %arg5[%c0_34, %c0_35] : memref<2x128xf32, #tpu.memory_space<vmem>>, vector<1x128xf32>
    %56 = vector.broadcast %55 : vector<1x128xf32> to vector<64x128xf32>
    %57 = arith.addf %53, %56 : vector<64x128xf32>
    %58 = arith.addf %54, %57 : vector<64x128xf32>
    %cst_36 = arith.constant 0.000000e+00 : f32
    %59 = vector.broadcast %cst_36 : f32 to vector<64x128xf32>
    %60 = arith.cmpf ogt, %58, %59 : vector<64x128xf32>
    %cst_37 = arith.constant 0.000000e+00 : f32
    %61 = vector.broadcast %cst_37 : f32 to vector<64x128xf32>
    %62 = arith.minimumf %58, %61 : vector<64x128xf32>
    %63 = math.exp %62 : vector<64x128xf32>
    %cst_38 = arith.constant 1.000000e+00 : f32
    %64 = vector.broadcast %cst_38 : f32 to vector<64x128xf32>
    %65 = arith.subf %63, %64 : vector<64x128xf32>
    %66 = arith.select %60, %58, %65 : vector<64x128xi1>, vector<64x128xf32>
    %67 = arith.truncf %66 : vector<64x128xf32> to vector<64x128xbf16>
    %c576 = arith.constant 576 : index
    %c0_39 = arith.constant 0 : index
    %68 = vector.load %arg1[%c576, %c0_39] : memref<864x256xbf16, #tpu.memory_space<vmem>>, vector<144x64xbf16>
    %cst_40 = arith.constant dense<0.000000e+00> : vector<144x128xf32>
    %69 = tpu.matmul %68, %67, %cst_40 {dimension_numbers = #tpu.dot_dimension_numbers<[1], [0], [0], [1], [0, 0, 1, 1], [], []>} : vector<144x64xbf16>, vector<64x128xbf16>, vector<144x128xf32> -> vector<144x128xf32>
    %70 = arith.truncf %69 : vector<144x128xf32> to vector<144x128xbf16>
    %71 = vector.extract_strided_slice %70 {offsets = [0, 0], sizes = [16, 128], strides = [1, 1]} : vector<144x128xbf16> to vector<16x128xbf16>
    %72 = vector.extract_strided_slice %70 {offsets = [16, 0], sizes = [16, 128], strides = [1, 1]} : vector<144x128xbf16> to vector<16x128xbf16>
    %73 = vector.extract_strided_slice %70 {offsets = [32, 0], sizes = [16, 128], strides = [1, 1]} : vector<144x128xbf16> to vector<16x128xbf16>
    %74 = vector.extract_strided_slice %70 {offsets = [48, 0], sizes = [16, 128], strides = [1, 1]} : vector<144x128xbf16> to vector<16x128xbf16>
    %75 = vector.extract_strided_slice %70 {offsets = [64, 0], sizes = [16, 128], strides = [1, 1]} : vector<144x128xbf16> to vector<16x128xbf16>
    %76 = vector.extract_strided_slice %70 {offsets = [80, 0], sizes = [16, 128], strides = [1, 1]} : vector<144x128xbf16> to vector<16x128xbf16>
    %77 = vector.extract_strided_slice %70 {offsets = [96, 0], sizes = [16, 128], strides = [1, 1]} : vector<144x128xbf16> to vector<16x128xbf16>
    %78 = vector.extract_strided_slice %70 {offsets = [112, 0], sizes = [16, 128], strides = [1, 1]} : vector<144x128xbf16> to vector<16x128xbf16>
    %79 = vector.extract_strided_slice %70 {offsets = [128, 0], sizes = [16, 128], strides = [1, 1]} : vector<144x128xbf16> to vector<16x128xbf16>
    %80 = tpu.concatenate %71, %72, %73, %74, %75, %76, %77, %78, %79 in 1 : vector<16x128xbf16>, vector<16x128xbf16>, vector<16x128xbf16>, vector<16x128xbf16>, vector<16x128xbf16>, vector<16x128xbf16>, vector<16x128xbf16>, vector<16x128xbf16>, vector<16x128xbf16> -> vector<16x1152xbf16>
    %c0_41 = arith.constant 0 : index
    %c0_42 = arith.constant 0 : index
    %81 = vector.load %arg3[%c0_41, %c0_42] : memref<1152x128xbf16, #tpu.memory_space<vmem>>, vector<1152x128xbf16>
    %cst_43 = arith.constant dense<0.000000e+00> : vector<16x128xf32>
    %82 = tpu.matmul %80, %81, %cst_43 {dimension_numbers = #tpu.dot_dimension_numbers<[1], [0], [0], [1], [0, 0, 1, 1], [], []>} : vector<16x1152xbf16>, vector<1152x128xbf16>, vector<16x128xf32> -> vector<16x128xf32>
    %c1_44 = arith.constant 1 : index
    %c0_45 = arith.constant 0 : index
    %83 = vector.load %arg5[%c1_44, %c0_45] : memref<2x128xf32, #tpu.memory_space<vmem>>, vector<1x128xf32>
    %84 = vector.broadcast %83 : vector<1x128xf32> to vector<16x128xf32>
    %85 = arith.addf %82, %84 : vector<16x128xf32>
    %cst_46 = arith.constant 0.000000e+00 : f32
    %86 = vector.broadcast %cst_46 : f32 to vector<16x128xf32>
    %87 = arith.cmpf ogt, %85, %86 : vector<16x128xf32>
    %cst_47 = arith.constant 0.000000e+00 : f32
    %88 = vector.broadcast %cst_47 : f32 to vector<16x128xf32>
    %89 = arith.minimumf %85, %88 : vector<16x128xf32>
    %90 = math.exp %89 : vector<16x128xf32>
    %cst_48 = arith.constant 1.000000e+00 : f32
    %91 = vector.broadcast %cst_48 : f32 to vector<16x128xf32>
    %92 = arith.subf %90, %91 : vector<16x128xf32>
    %93 = arith.select %87, %85, %92 : vector<16x128xi1>, vector<16x128xf32>
    %94 = arith.truncf %93 : vector<16x128xf32> to vector<16x128xbf16>
    %c720 = arith.constant 720 : index
    %c0_49 = arith.constant 0 : index
    %95 = vector.load %arg1[%c720, %c0_49] : memref<864x256xbf16, #tpu.memory_space<vmem>>, vector<144x16xbf16>
    %cst_50 = arith.constant dense<0.000000e+00> : vector<144x128xf32>
    %96 = tpu.matmul %95, %94, %cst_50 {dimension_numbers = #tpu.dot_dimension_numbers<[1], [0], [0], [1], [0, 0, 1, 1], [], []>} : vector<144x16xbf16>, vector<16x128xbf16>, vector<144x128xf32> -> vector<144x128xf32>
    %97 = arith.truncf %96 : vector<144x128xf32> to vector<144x128xbf16>
    %98 = vector.extract_strided_slice %97 {offsets = [0, 0], sizes = [16, 128], strides = [1, 1]} : vector<144x128xbf16> to vector<16x128xbf16>
    %99 = vector.extract_strided_slice %97 {offsets = [16, 0], sizes = [16, 128], strides = [1, 1]} : vector<144x128xbf16> to vector<16x128xbf16>
    %100 = vector.extract_strided_slice %97 {offsets = [32, 0], sizes = [16, 128], strides = [1, 1]} : vector<144x128xbf16> to vector<16x128xbf16>
    %101 = vector.extract_strided_slice %97 {offsets = [48, 0], sizes = [16, 128], strides = [1, 1]} : vector<144x128xbf16> to vector<16x128xbf16>
    %102 = vector.extract_strided_slice %97 {offsets = [64, 0], sizes = [16, 128], strides = [1, 1]} : vector<144x128xbf16> to vector<16x128xbf16>
    %103 = vector.extract_strided_slice %97 {offsets = [80, 0], sizes = [16, 128], strides = [1, 1]} : vector<144x128xbf16> to vector<16x128xbf16>
    %104 = vector.extract_strided_slice %97 {offsets = [96, 0], sizes = [16, 128], strides = [1, 1]} : vector<144x128xbf16> to vector<16x128xbf16>
    %105 = vector.extract_strided_slice %97 {offsets = [112, 0], sizes = [16, 128], strides = [1, 1]} : vector<144x128xbf16> to vector<16x128xbf16>
    %106 = vector.extract_strided_slice %97 {offsets = [128, 0], sizes = [16, 128], strides = [1, 1]} : vector<144x128xbf16> to vector<16x128xbf16>
    %107 = tpu.concatenate %98, %99, %100, %101, %102, %103, %104, %105, %106 in 1 : vector<16x128xbf16>, vector<16x128xbf16>, vector<16x128xbf16>, vector<16x128xbf16>, vector<16x128xbf16>, vector<16x128xbf16>, vector<16x128xbf16>, vector<16x128xbf16>, vector<16x128xbf16> -> vector<16x1152xbf16>
    %c0_51 = arith.constant 0 : index
    %c0_52 = arith.constant 0 : index
    %108 = vector.load %arg4[%c0_51, %c0_52] : memref<16x1152xbf16, #tpu.memory_space<vmem>>, vector<16x1152xbf16>
    %109 = tpu.transpose %107, [1, 0] : vector<16x1152xbf16> -> vector<1152x16xbf16>
    %cst_53 = arith.constant dense<0.000000e+00> : vector<16x16xf32>
    %110 = tpu.matmul %108, %109, %cst_53 {dimension_numbers = #tpu.dot_dimension_numbers<[1], [0], [0], [1], [0, 0, 1, 1], [], []>} : vector<16x1152xbf16>, vector<1152x16xbf16>, vector<16x16xf32> -> vector<16x16xf32>
    %cst_54 = arith.constant 0.000000e+00 : f32
    %111 = vector.broadcast %cst_54 : f32 to vector<16x16xf32>
    %112 = arith.cmpf ogt, %110, %111 : vector<16x16xf32>
    %cst_55 = arith.constant 0.000000e+00 : f32
    %113 = vector.broadcast %cst_55 : f32 to vector<16x16xf32>
    %114 = arith.minimumf %110, %113 : vector<16x16xf32>
    %115 = math.exp %114 : vector<16x16xf32>
    %cst_56 = arith.constant 1.000000e+00 : f32
    %116 = vector.broadcast %cst_56 : f32 to vector<16x16xf32>
    %117 = arith.subf %115, %116 : vector<16x16xf32>
    %118 = arith.select %112, %110, %117 : vector<16x16xi1>, vector<16x16xf32>
    %119 = vector.extract_strided_slice %118 {offsets = [0, 0], sizes = [16, 4], strides = [1, 1]} : vector<16x16xf32> to vector<16x4xf32>
    %c0_57 = arith.constant 0 : index
    %c0_58 = arith.constant 0 : index
    %120 = vector.load %arg6[%c0_57, %c0_58] : memref<16x4xf32, #tpu.memory_space<vmem>>, vector<16x4xf32>
    tpu.vector_store %arg6[%c0_57, %c0_58], %119 {strides = array<i32>} : memref<16x4xf32, #tpu.memory_space<vmem>>, vector<16x4xf32>,
    return
  }
}

</mosaic_0001>

<bundles_post_ra>
// kernel: forward.1
= control target key start
LH: loop header
LB: loop body
LE: loop exit
PB: predicated region body
PF: predicated region fallthrough
CT: control target
= control target key end

     0   :  { %11 = vsyncpa [#allocation3], 0  ;;  %s4571_s0 = inlined_call_operand.vmem [shape: f32[4,256], index: 0, kind: input, shape index: {}]   ;;  %s4572_s1 = inlined_call_operand.hbm [shape: bf16[864,256], index: 1, kind: input, shape index: {}]   ;;  %s4573_s2 = inlined_call_operand.hbm [shape: bf16[9,4,128], index: 2, kind: input, shape index: {}]   ;;  %s4574_s3 = inlined_call_operand.hbm [shape: bf16[1152,128], index: 3, kind: input, shape index: {}]   ;;  %s4575_s4 = inlined_call_operand.vmem [shape: bf16[16,1152], index: 4, kind: input, shape index: {}]   ;;  %s4576_s5 = inlined_call_operand.vmem [shape: f32[2,128], index: 5, kind: input, shape index: {}]   ;;  %s4577_s6 = inlined_call_operand.vmem [shape: f32[16,4], index: 6, kind: output, shape index: {}]  }
   0x1   :  { %12 = vsyncpa [#allocation5], 0  ;;  %s4118_s21 = smov [#allocation4]  }
   0x2   :  { %s32_s22 = sshll.u32 %s4118_s21, 4  ;;  %s33_s22 = int_to_ptr.vmem [resolvable:$true] %s32_s22 }
   0x3   :  { %s4062_s23 = scalar_lea.vmem %s33_s22, 288  ;;  %p4067_p1 = scmp.lt.s32.totalorder %s33_s22, %s33_s22 }
   0x4   :  { %p4063_p0 = scmp.ne.s32.totalorder %s33_s22, %s4062_s23  ;;  %p4068_p2 = scmp.lt.s32.totalorder %s4062_s23, %s4062_s23 }
   0x6   :  { %p4069_p3 = por %p4068_p2, %p4067_p1 }
   0x8   :  { %p4070_p4 = pnand %p4069_p3, %p4063_p0 }
   0xa   :  { %4073 = shalt.err (!%p4070_p4)
}
   0xb   :  { %s4119_s24 = smov 32   ;;  %s4120_s25 = smov 2  }
   0xc   :  { %38 = dma.hbm_to_vmem [thread:$0]  %s4573_s2, 288, %s33_s22, [#allocation5], %s4119_s24, %s4119_s24, %s4120_s25  }
   0xd   :  { %s4121_s28 = smov [#allocation2]  }
   0xe   :  { %s20_s29 = sshll.u32 %s4121_s28, 4  ;;  %s21_s29 = int_to_ptr.vmem [resolvable:$true] %s20_s29 }
   0xf   :  { %s4082_s30 = scalar_lea.vmem %s21_s29, 13824  ;;  %p4087_p6 = scmp.lt.s32.totalorder %s21_s29, %s21_s29 }
  0x10   :  { %p4083_p5 = scmp.ne.s32.totalorder %s21_s29, %s4082_s30  ;;  %p4088_p7 = scmp.lt.s32.totalorder %s4082_s30, %s4082_s30 }
  0x12   :  { %p4089_p8 = por %p4088_p7, %p4087_p6 }
  0x14   :  { %p4090_p9 = pnand %p4089_p8, %p4083_p5 }
  0x16   :  { %4093 = shalt.err (!%p4090_p9)
}
  0x17   :  { %s4122_s7 = smov 128   ;;  %s4123_s8 = smov 8  }
  0x18   :  { %26 = dma.hbm_to_vmem [thread:$0]  %s4572_s1, 13824, %s21_s29, [#allocation3], %s4122_s7, %s4122_s7, %s4123_s8  }
  0x19   :  { %s4124_s11 = smov [#allocation6]  }
  0x1a   :  { %s44_s12 = sshll.u32 %s4124_s11, 4  ;;  %s45_s12 = int_to_ptr.vmem [resolvable:$true] %s44_s12 }
  0x1b   :  { %s4102_s2 = scalar_lea.vmem %s45_s12, 9216  ;;  %p4107_p11 = scmp.lt.s32.totalorder %s45_s12, %s45_s12 }
  0x1c   :  { %p4103_p10 = scmp.ne.s32.totalorder %s45_s12, %s4102_s2  ;;  %p4108_p12 = scmp.lt.s32.totalorder %s4102_s2, %s4102_s2 }
  0x1e   :  { %p4109_p13 = por %p4108_p12, %p4107_p11 }
  0x20   :  { %p4110_p0 = pnand %p4109_p13, %p4103_p10 }
  0x22   :  { %4113 = shalt.err (!%p4110_p0)
}
  0x23   :  { %s4125_s13 = smov 64   ;;  %s4126_s14 = smov 4  }
  0x24   :  { %50 = dma.hbm_to_vmem [thread:$0]  %s4574_s3, 9216, %s45_s12, [#allocation5], %s4125_s13, %s4125_s13, %s4126_s14  }
  0x25   :  { %4114 = dma.done.wait [#allocation3], 13824  }
  0x26   :  { %4115 = vsyncadd [#allocation3], 4294953472 }
  0x27   :  { %4116 = dma.done.wait [#allocation5], 9504  }
  0x28   :  { %4117 = vsyncadd [#allocation5], 4294957792  ;;  %v65_v0 = vld [vmem:[%s4571_s0] sm:$0xff]  ;;  %v3822_v6 = vld [vmem:[#allocation2 + $0x14] ss:$8 sps:$4 sm:$0xff]   ;;  %vm880_vm0 = vcmask 1041408  }
  0x29   :  { %v67_v1 = vcombine.high %v65_v0, %v65_v0  ;;  %v3821_v2 = vld [vmem:[#allocation2 + $0x4] ss:$8 sps:$4 sm:$0xff]   ;;  %v69_v3 = vpack.c.bf16 %v65_v0, %v65_v0  ;;  %v3819_v5 = vld [vmem:[#allocation2] ss:$8 sps:$4 sm:$0xff]   ;;  %v3824_v7 = vld [vmem:[#allocation2 + $0x10] ss:$8 sps:$4 sm:$0xff]  }
  0x2a   :  { %535 = vmatprep.mubr.bf16.mxu0 %v3821_v2  ;;  %v3825_v8 = vld [vmem:[#allocation2 + $0x24] ss:$8 sps:$4 sm:$0xff]   ;;  %v3827_v9 = vld [vmem:[#allocation2 + $0x20] ss:$8 sps:$4 sm:$0xff]   ;;  %v3828_v10 = vld [vmem:[#allocation2 + $0x34] ss:$8 sps:$4 sm:$0xff]  }
  0x2b   :  { %v70_v4 = vpack.c.bf16 %v67_v1, %v67_v1  ;;  %v3830_v11 = vld [vmem:[#allocation2 + $0x30] ss:$8 sps:$4 sm:$0xff]   ;;  %v3831_v12 = vld [vmem:[#allocation2 + $0x44] ss:$8 sps:$4 sm:$0xff]   ;;  %v3833_v13 = vld [vmem:[#allocation2 + $0x40] ss:$8 sps:$4 sm:$0xff]  }
  0x2c   :  { %v3834_v14 = vld [vmem:[#allocation2 + $0x54] ss:$8 sps:$4 sm:$0xff]   ;;  %v3836_v15 = vld [vmem:[#allocation2 + $0x50] ss:$8 sps:$4 sm:$0xff]   ;;  %v3837_v16 = vld [vmem:[#allocation2 + $0x64] ss:$8 sps:$4 sm:$0xff]  }
  0x2d   :  { %517 = vmatprep.subr.bf16.mxu0 %v70_v4  ;;  %v3839_v17 = vld [vmem:[#allocation2 + $0x60] ss:$8 sps:$4 sm:$0xff]   ;;  %v3840_v18 = vld [vmem:[#allocation2 + $0x74] ss:$8 sps:$4 sm:$0xff]   ;;  %v3842_v19 = vld [vmem:[#allocation2 + $0x70] ss:$8 sps:$4 sm:$0xff]  }
  0x2e   :  { %518 = vmatpush1.bf16.xpose.msra.mxu0 %v69_v3  ;;  %v3843_v20 = vld [vmem:[#allocation2 + $0x84] ss:$8 sps:$4 sm:$0xff]   ;;  %v3845_v21 = vld [vmem:[#allocation2 + $0x80] ss:$8 sps:$4 sm:$0xff]   ;;  %v3846_v22 = vld [vmem:[#allocation2 + $0x94] ss:$8 sps:$4 sm:$0xff]  }
  0x2f   :  { %v3848_v23 = vld [vmem:[#allocation2 + $0x90] ss:$8 sps:$4 sm:$0xff]   ;;  %v3849_v24 = vld [vmem:[#allocation2 + $0xa4] ss:$8 sps:$4 sm:$0xff]   ;;  %v3851_v25 = vld [vmem:[#allocation2 + $0xa0] ss:$8 sps:$4 sm:$0xff]  }
  0x30   :  { %v3852_v26 = vld [vmem:[#allocation2 + $0xb4] ss:$8 sps:$4 sm:$0xff]   ;;  %v3854_v27 = vld [vmem:[#allocation2 + $0xb0] ss:$8 sps:$4 sm:$0xff]   ;;  %v3855_v28 = vld [vmem:[#allocation2 + $0xc4] ss:$8 sps:$4 sm:$0xff]  }
  0x31   :  { %v3857_v29 = vld [vmem:[#allocation2 + $0xc0] ss:$8 sps:$4 sm:$0xff]   ;;  %v3858_v30 = vld [vmem:[#allocation2 + $0xd4] ss:$8 sps:$4 sm:$0xff]   ;;  %v3860_v31 = vld [vmem:[#allocation2 + $0xd0] ss:$8 sps:$4 sm:$0xff]  }
  0x32   :  { %v3861_v32 = vld [vmem:[#allocation2 + $0xe4] ss:$8 sps:$4 sm:$0xff]   ;;  %v3863_v33 = vld [vmem:[#allocation2 + $0xe0] ss:$8 sps:$4 sm:$0xff]   ;;  %v3864_v34 = vld [vmem:[#allocation2 + $0xf4] ss:$8 sps:$4 sm:$0xff]  }
  0x33   :  { %v3866_v35 = vld [vmem:[#allocation2 + $0xf0] ss:$8 sps:$4 sm:$0xff]   ;;  %v3867_v36 = vld [vmem:[#allocation2 + $0x104] ss:$8 sps:$4 sm:$0xff]   ;;  %v3869_v37 = vld [vmem:[#allocation2 + $0x100] ss:$8 sps:$4 sm:$0xff]  }
  0x34   :  { %v3870_v38 = vld [vmem:[#allocation2 + $0x114] ss:$8 sps:$4 sm:$0xff]   ;;  %v3872_v39 = vld [vmem:[#allocation2 + $0x110] ss:$8 sps:$4 sm:$0xff]   ;;  %v3873_v40 = vld [vmem:[#allocation2 + $0x124] ss:$8 sps:$4 sm:$0xff]  }
  0x35   :  { %536 = vmatmul.mubr.bf16.vlgmr.msra.gmra.mxu0 %v3819_v5  ;;  %v3875_v41 = vld [vmem:[#allocation2 + $0x120] ss:$8 sps:$4 sm:$0xff]   ;;  %v3876_v42 = vld [vmem:[#allocation2 + $0x134] ss:$8 sps:$4 sm:$0xff]   ;;  %v3878_v43 = vld [vmem:[#allocation2 + $0x130] ss:$8 sps:$4 sm:$0xff]  }
  0x36   :  { %543 = vmatprep.mubr.bf16.mxu0 %v3822_v6  ;;  %v3879_v44 = vld [vmem:[#allocation2 + $0x144] ss:$8 sps:$4 sm:$0xff]   ;;  %v3881_v45 = vld [vmem:[#allocation2 + $0x140] ss:$8 sps:$4 sm:$0xff]   ;;  %v3882_v46 = vld [vmem:[#allocation2 + $0x154] ss:$8 sps:$4 sm:$0xff]  }
  0x37   :  { %v3884_v47 = vld [vmem:[#allocation2 + $0x150] ss:$8 sps:$4 sm:$0xff]   ;;  %v3885_v48 = vld [vmem:[#allocation2 + $0x164] ss:$8 sps:$4 sm:$0xff]   ;;  %v3887_v51 = vld [vmem:[#allocation2 + $0x160] ss:$8 sps:$4 sm:$0xff]  }
  0x38   :  { %v866_v49 = vld [vmem:[#allocation4 + $0x6] sm:$0x3]  ;;  %v3888_v52 = vld [vmem:[#allocation2 + $0x174] ss:$8 sps:$4 sm:$0xff]   ;;  %v3890_v53 = vld [vmem:[#allocation2 + $0x170] ss:$8 sps:$4 sm:$0xff]  }
  0x39   :  { %3798 = vmatprep.subr.msk.bf16.mxu1 %vm880_vm0, %v866_v49  ;;  %v882_v50 = vsel %vm880_vm0, %v866_v49, 0  ;;  %v3891_v54 = vld [vmem:[#allocation2 + $0x184] ss:$8 sps:$4 sm:$0xff]   ;;  %v3893_v55 = vld [vmem:[#allocation2 + $0x180] ss:$8 sps:$4 sm:$0xff]   ;;  %vm867_vm1 = vcmask 31744  }
  0x3a   :  { %3601 = vmatpush3.bf16.msra.mxu1 %v882_v50  ;;  %v3894_v56 = vld [vmem:[#allocation2 + $0x194] ss:$8 sps:$4 sm:$0xff]   ;;  %v4180_v59 = vld [vmem:[#allocation4] sm:$0x3]  ;;  %v3896_v61 = vld [vmem:[#allocation2 + $0x190] ss:$8 sps:$4 sm:$0xff]  }
  0x3b   :  { %3799 = vmatprep.subr.msk.bf16.mxu1 %vm880_vm0, %v4180_v59  ;;  %v3897_v63 = vld [vmem:[#allocation2 + $0x1a4] ss:$8 sps:$4 sm:$0xff]   ;;  %v3899_v4 = vld [vmem:[#allocation2 + $0x1a0] ss:$8 sps:$4 sm:$0xff]   ;;  %v3900_v6 = vld [vmem:[#allocation2 + $0x1b4] ss:$8 sps:$4 sm:$0xff]  }
  0x3c   :  { %vm4128_vm2 = vmmov 0   ;;  %vm1767_vm11 = vcmask 523264   ;;  %vm2771_vm14 = vcmask 130048  }
  0x3d   :  { %544 = vmatmul.mubr.bf16.gmra.mxu0 %v3824_v7 }
  0x3e   :  { %551 = vmatprep.mubr.bf16.mxu0 %v3825_v8 }
  0x45   :  { %552 = vmatmul.mubr.bf16.gmra.mxu0 %v3827_v9 }
  0x46   :  { %559 = vmatprep.mubr.bf16.mxu0 %v3828_v10 }
  0x4d   :  { %560 = vmatmul.mubr.bf16.gmra.mxu0 %v3830_v11  ;;  %v3902_v11 = vld [vmem:[#allocation2 + $0x1b0] ss:$8 sps:$4 sm:$0xff]  }
  0x4e   :  { %567 = vmatprep.mubr.bf16.mxu0 %v3831_v12 }
  0x55   :  { %568 = vmatmul.mubr.bf16.gmra.mxu0 %v3833_v13  ;;  %v3905_v13 = vld [vmem:[#allocation2 + $0x1c4] ss:$8 sps:$4 sm:$0xff]  }
  0x56   :  { %575 = vmatprep.mubr.bf16.mxu0 %v3834_v14 }
  0x5d   :  { %576 = vmatmul.mubr.bf16.gmra.mxu0 %v3836_v15 }
  0x5e   :  { %583 = vmatprep.mubr.bf16.mxu0 %v3837_v16 }
  0x65   :  { %584 = vmatmul.mubr.bf16.gmra.mxu0 %v3839_v17 }
  0x66   :  { %591 = vmatprep.mubr.bf16.mxu0 %v3840_v18  ;;  %v3903_v18 = vld [vmem:[#allocation2 + $0x1c0] ss:$8 sps:$4 sm:$0xff]  }
  0x6d   :  { %592 = vmatmul.mubr.bf16.gmra.mxu0 %v3842_v19 }
  0x6e   :  { %599 = vmatprep.mubr.bf16.mxu0 %v3843_v20  ;;  %v3908_v20 = vld [vmem:[#allocation2 + $0x1d4] ss:$8 sps:$4 sm:$0xff]  }
  0x75   :  { %600 = vmatmul.mubr.bf16.gmra.mxu0 %v3845_v21 }
  0x76   :  { %607 = vmatprep.mubr.bf16.mxu0 %v3846_v22 }
  0x7d   :  { %608 = vmatmul.mubr.bf16.gmra.mxu0 %v3848_v23 }
  0x7e   :  { %615 = vmatprep.mubr.bf16.mxu0 %v3849_v24 }
  0x85   :  { %616 = vmatmul.mubr.bf16.gmra.mxu0 %v3851_v25  ;;  %v3906_v25 = vld [vmem:[#allocation2 + $0x1d0] ss:$8 sps:$4 sm:$0xff]  }
  0x86   :  { %623 = vmatprep.mubr.bf16.mxu0 %v3852_v26 }
  0x8d   :  { %624 = vmatmul.mubr.bf16.gmra.mxu0 %v3854_v27  ;;  %v3911_v27 = vld [vmem:[#allocation2 + $0x1e4] ss:$8 sps:$4 sm:$0xff]  }
  0x8e   :  { %631 = vmatprep.mubr.bf16.mxu0 %v3855_v28 }
  0x95   :  { %632 = vmatmul.mubr.bf16.gmra.mxu0 %v3857_v29 }
  0x96   :  { %639 = vmatprep.mubr.bf16.mxu0 %v3858_v30 }
  0x9d   :  { %640 = vmatmul.mubr.bf16.gmra.mxu0 %v3860_v31 }
  0x9e   :  { %647 = vmatprep.mubr.bf16.mxu0 %v3861_v32  ;;  %v3909_v32 = vld [vmem:[#allocation2 + $0x1e0] ss:$8 sps:$4 sm:$0xff]  }
  0xa5   :  { %648 = vmatmul.mubr.bf16.gmra.mxu0 %v3863_v33 }
  0xa6   :  { %655 = vmatprep.mubr.bf16.mxu0 %v3864_v34  ;;  %v3914_v34 = vld [vmem:[#allocation2 + $0x1f4] ss:$8 sps:$4 sm:$0xff]  }
  0xad   :  { %656 = vmatmul.mubr.bf16.gmra.mxu0 %v3866_v35 }
  0xae   :  { %663 = vmatprep.mubr.bf16.mxu0 %v3867_v36 }
  0xb5   :  { %664 = vmatmul.mubr.bf16.gmra.mxu0 %v3869_v37 }
  0xb6   :  { %671 = vmatprep.mubr.bf16.mxu0 %v3870_v38 }
  0xbd   :  { %672 = vmatmul.mubr.bf16.gmra.mxu0 %v3872_v39  ;;  %v3912_v39 = vld [vmem:[#allocation2 + $0x1f0] ss:$8 sps:$4 sm:$0xff]  }
  0xbe   :  { %679 = vmatprep.mubr.bf16.mxu0 %v3873_v40 }
  0xc5   :  { %680 = vmatmul.mubr.bf16.gmra.mxu0 %v3875_v41  ;;  %v3917_v41 = vld [vmem:[#allocation2 + $0x204] ss:$8 sps:$4 sm:$0xff]  }
  0xc6   :  { %687 = vmatprep.mubr.bf16.mxu0 %v3876_v42 }
  0xcd   :  { %688 = vmatmul.mubr.bf16.gmra.mxu0 %v3878_v43 }
  0xce   :  { %695 = vmatprep.mubr.bf16.mxu0 %v3879_v44 }
  0xd5   :  { %696 = vmatmul.mubr.bf16.gmra.mxu0 %v3881_v45 }
  0xd6   :  { %703 = vmatprep.mubr.bf16.mxu0 %v3882_v46  ;;  %v3915_v46 = vld [vmem:[#allocation2 + $0x200] ss:$8 sps:$4 sm:$0xff]  }
  0xdd   :  { %704 = vmatmul.mubr.bf16.gmra.mxu0 %v3884_v47 }
  0xde   :  { %711 = vmatprep.mubr.bf16.mxu0 %v3885_v48  ;;  %v3920_v48 = vld [vmem:[#allocation2 + $0x214] ss:$8 sps:$4 sm:$0xff]  }
  0xe5   :  { %712 = vmatmul.mubr.bf16.gmra.mxu0 %v3887_v51 }
  0xe6   :  { %719 = vmatprep.mubr.bf16.mxu0 %v3888_v52 }
  0xed   :  { %720 = vmatmul.mubr.bf16.gmra.mxu0 %v3890_v53  ;;  %v3918_v53 = vld [vmem:[#allocation2 + $0x210] ss:$8 sps:$4 sm:$0xff]  }
  0xee   :  { %727 = vmatprep.mubr.bf16.mxu0 %v3891_v54 }
  0xf5   :  { %v4178_v57 = vpop.f32.mrf.mxu0  ;;  %728 = vmatmul.mubr.bf16.gmra.mxu0 %v3893_v55  ;;  %v3923_v55 = vld [vmem:[#allocation2 + $0x224] ss:$8 sps:$4 sm:$0xff]  }
  0xf6   :  { %735 = vmatprep.mubr.bf16.mxu0 %v3894_v56 }
  0xf7   :  { %v539_v58 = vpop.f32.mrf.mxu0 }
  0xf9   :  { %v4184_v60 = vpop.f32.mrf.mxu0 }
  0xfa   :  { %v824_v62 = vpack.c.bf16 %v4184_v60, %v4178_v57 }
  0xfb   :  { %v542_v0 = vpop.f32.mrf.mxu0 }
  0xfc   :  { %v3921_v0 = vld [vmem:[#allocation2 + $0x220] ss:$8 sps:$4 sm:$0xff]  }
  0xfd   :  { %v4188_v1 = vpop.f32.mrf.mxu0  ;;  %736 = vmatmul.mubr.bf16.gmra.mxu0 %v3896_v61 }
  0xfe   :  { %743 = vmatprep.mubr.bf16.mxu0 %v3897_v63 }
  0xff   :  { %v547_v2 = vpop.f32.mrf.mxu0 }
 0x101   :  { %v4190_v3 = vpop.f32.mrf.mxu0 }
 0x102   :  { %v825_v5 = vpack.c.bf16 %v4190_v3, %v4188_v1 }
 0x103   :  { %v550_v7 = vpop.f32.mrf.mxu0 }
 0x105   :  { %v4194_v8 = vpop.f32.mrf.mxu0  ;;  %744 = vmatmul.mubr.bf16.gmra.mxu0 %v3899_v4  ;;  %v3926_v4 = vld [vmem:[#allocation2 + $0x234] ss:$8 sps:$4 sm:$0xff]  }
 0x106   :  { %751 = vmatprep.mubr.bf16.mxu0 %v3900_v6 }
 0x107   :  { %v555_v9 = vpop.f32.mrf.mxu0 }
 0x109   :  { %v4196_v10 = vpop.f32.mrf.mxu0 }
 0x10a   :  { %v826_v12 = vpack.c.bf16 %v4196_v10, %v4194_v8 }
 0x10b   :  { %v558_v14 = vpop.f32.mrf.mxu0 }
 0x10d   :  { %v4200_v15 = vpop.f32.mrf.mxu0  ;;  %752 = vmatmul.mubr.bf16.gmra.mxu0 %v3902_v11 }
 0x10e   :  { %759 = vmatprep.mubr.bf16.mxu0 %v3905_v13  ;;  %v3924_v13 = vld [vmem:[#allocation2 + $0x230] ss:$8 sps:$4 sm:$0xff]  }
 0x10f   :  { %v563_v16 = vpop.f32.mrf.mxu0 }
 0x111   :  { %v4202_v17 = vpop.f32.mrf.mxu0 }
 0x112   :  { %v827_v19 = vpack.c.bf16 %v4202_v17, %v4200_v15 }
 0x113   :  { %v566_v21 = vpop.f32.mrf.mxu0 }
 0x115   :  { %v4206_v22 = vpop.f32.mrf.mxu0  ;;  %760 = vmatmul.mubr.bf16.gmra.mxu0 %v3903_v18 }
 0x116   :  { %767 = vmatprep.mubr.bf16.mxu0 %v3908_v20 }
 0x117   :  { %v571_v23 = vpop.f32.mrf.mxu0 }
 0x119   :  { %v4208_v24 = vpop.f32.mrf.mxu0 }
 0x11a   :  { %v828_v26 = vpack.c.bf16 %v4208_v24, %v4206_v22 }
 0x11b   :  { %v574_v28 = vpop.f32.mrf.mxu0 }
 0x11d   :  { %v4212_v29 = vpop.f32.mrf.mxu0  ;;  %768 = vmatmul.mubr.bf16.gmra.mxu0 %v3906_v25 }
 0x11e   :  { %775 = vmatprep.mubr.bf16.mxu0 %v3911_v27 }
 0x11f   :  { %v579_v30 = vpop.f32.mrf.mxu0 }
 0x121   :  { %v4214_v31 = vpop.f32.mrf.mxu0 }
 0x122   :  { %v829_v33 = vpack.c.bf16 %v4214_v31, %v4212_v29 }
 0x123   :  { %v582_v35 = vpop.f32.mrf.mxu0 }
 0x125   :  { %v4218_v36 = vpop.f32.mrf.mxu0  ;;  %776 = vmatmul.mubr.bf16.gmra.mxu0 %v3909_v32 }
 0x126   :  { %783 = vmatprep.mubr.bf16.mxu0 %v3914_v34 }
 0x127   :  { %v587_v37 = vpop.f32.mrf.mxu0 }
 0x129   :  { %v4220_v38 = vpop.f32.mrf.mxu0 }
 0x12a   :  { %v830_v40 = vpack.c.bf16 %v4220_v38, %v4218_v36 }
 0x12b   :  { %v590_v42 = vpop.f32.mrf.mxu0 }
 0x12c   :  { %v962_v42 = vsel %vm880_vm0, %v4180_v59, 0 }
 0x12d   :  { %v4224_v43 = vpop.f32.mrf.mxu0  ;;  %784 = vmatmul.mubr.bf16.gmra.mxu0 %v3912_v39 }
 0x12e   :  { %791 = vmatprep.mubr.bf16.mxu0 %v3917_v41 }
 0x12f   :  { %v595_v44 = vpop.f32.mrf.mxu0 }
 0x131   :  { %v4226_v45 = vpop.f32.mrf.mxu0 }
 0x132   :  { %v831_v47 = vpack.c.bf16 %v4226_v45, %v4224_v43 }
 0x133   :  { %v598_v49 = vpop.f32.mrf.mxu0 }
 0x135   :  { %v4230_v50 = vpop.f32.mrf.mxu0  ;;  %792 = vmatmul.mubr.bf16.gmra.mxu0 %v3915_v46  ;;  %v1030_v46 = vld [vmem:[#allocation4 + $0x8] sm:$0x3] }
 0x136   :  { %799 = vmatprep.mubr.bf16.mxu0 %v3920_v48 }
 0x137   :  { %v603_v51 = vpop.f32.mrf.mxu0 }
 0x139   :  { %v4232_v52 = vpop.f32.mrf.mxu0 }
 0x13a   :  { %v832_v54 = vpack.c.bf16 %v4232_v52, %v4230_v50 }
 0x13b   :  { %v606_v56 = vpop.f32.mrf.mxu0 }
 0x13d   :  { %v4236_v58 = vpop.f32.mrf.mxu0  ;;  %800 = vmatmul.mubr.bf16.gmra.mxu0 %v3918_v53 }
 0x13e   :  { %807 = vmatprep.mubr.bf16.mxu0 %v3923_v55 }
 0x13f   :  { %v611_v61 = vpop.f32.mrf.mxu0 }
 0x141   :  { %v4238_v63 = vpop.f32.mrf.mxu0 }
 0x142   :  { %v833_v2 = vpack.c.bf16 %v4238_v63, %v4236_v58 }
 0x143   :  { %v614_v6 = vpop.f32.mrf.mxu0 }
 0x145   :  { %v4242_v7 = vpop.f32.mrf.mxu0  ;;  %808 = vmatmul.mubr.bf16.gmra.mxu0 %v3921_v0 }
 0x146   :  { %815 = vmatprep.mubr.bf16.mxu0 %v3926_v4 }
 0x147   :  { %v619_v9 = vpop.f32.mrf.mxu0 }
 0x149   :  { %v4244_v11 = vpop.f32.mrf.mxu0 }
 0x14a   :  { %v834_v14 = vpack.c.bf16 %v4244_v11, %v4242_v7 }
 0x14b   :  { %v622_v16 = vpop.f32.mrf.mxu0 }
 0x14c   :  { %v1044_v16 = vsel %vm880_vm0, %v1030_v46, 0 }
 0x14d   :  { %v4248_v18 = vpop.f32.mrf.mxu0  ;;  %816 = vmatmul.mubr.bf16.gmra.mxu0 %v3924_v13 }
 0x14f   :  { %v627_v20 = vpop.f32.mrf.mxu0 }
 0x151   :  { %v4250_v21 = vpop.f32.mrf.mxu0 }
 0x152   :  { %v835_v23 = vpack.c.bf16 %v4250_v21, %v4248_v18 }
 0x153   :  { %v630_v25 = vpop.f32.mrf.mxu0 }
 0x154   :  { %v862_v25 = vld [vmem:[#allocation4 + $0x2] sm:$0x3] }
 0x155   :  { %v633_v27 = vpop.f32.mrf.mxu0 }
 0x157   :  { %v635_v28 = vpop.f32.mrf.mxu0 }
 0x159   :  { %v636_v30 = vpop.f32.mrf.mxu0 }
 0x15a   :  { %v836_v32 = vpack.c.bf16 %v636_v30, %v633_v27 }
 0x15b   :  { %v638_v34 = vpop.f32.mrf.mxu0 }
 0x15c   :  { %3602 = vmatprep.mubr.msk.bf16.mxu1 %vm867_vm1, %v836_v32  ;;  %v1192_v32 = vld [vmem:[#allocation4 + $0xa] sm:$0x3] }
 0x15d   :  { %v641_v35 = vpop.f32.mrf.mxu0 }
 0x15f   :  { %v643_v37 = vpop.f32.mrf.mxu0 }
 0x161   :  { %v644_v39 = vpop.f32.mrf.mxu0 }
 0x162   :  { %v837_v41 = vpack.c.bf16 %v644_v39, %v641_v35 }
 0x163   :  { %v646_v44 = vpop.f32.mrf.mxu0 }
 0x164   :  { %3603 = vmatmul.mubr.msk.bf16.vlgmr.msra.gmra.mxu1 %vm867_vm1, %v837_v41 }
 0x165   :  { %v649_v48 = vpop.f32.mrf.mxu0  ;;  %3611 = vmatpush3.bf16.msra.mxu1 %v962_v42  ;;  %v1206_v42 = vsel %vm880_vm0, %v1192_v32, 0 }
 0x166   :  { %3800 = vmatprep.subr.msk.bf16.mxu1 %vm880_vm0, %v1030_v46  ;;  %v864_v46 = vld [vmem:[#allocation4 + $0x4] sm:$0x3] }
 0x167   :  { %v651_v49 = vpop.f32.mrf.mxu0 }
 0x169   :  { %v652_v51 = vpop.f32.mrf.mxu0 }
 0x16a   :  { %v838_v53 = vpack.c.bf16 %v652_v51, %v649_v48 }
 0x16b   :  { %v654_v55 = vpop.f32.mrf.mxu0 }
 0x16c   :  { %3606 = vmatprep.mubr.msk.bf16.mxu1 %vm867_vm1, %v838_v53  ;;  %v1354_v53 = vld [vmem:[#allocation4 + $0xc] sm:$0x3] }
 0x16d   :  { %v657_v56 = vpop.f32.mrf.mxu0 }
 0x16f   :  { %v659_v61 = vpop.f32.mrf.mxu0 }
 0x171   :  { %v660_v0 = vpop.f32.mrf.mxu0 }
 0x172   :  { %v839_v4 = vpack.c.bf16 %v660_v0, %v657_v56 }
 0x173   :  { %v662_v6 = vpop.f32.mrf.mxu0 }
 0x174   :  { %3607 = vmatmul.mubr.msk.bf16.gmra.mxu1 %vm867_vm1, %v839_v4  ;;  %v1368_v6 = vsel %vm880_vm0, %v1354_v53, 0 }
 0x175   :  { %v665_v59 = vpop.f32.mrf.mxu0  ;;  %3612 = vmatprep.mubr.msk.bf16.mxu1 %vm867_vm1, %v824_v62 }
 0x177   :  { %v667_v9 = vpop.f32.mrf.mxu0 }
 0x178   :  { %v1444_v9 = vld [vmem:[#allocation4 + $0xe] sm:$0x3] }
 0x179   :  { %v668_v13 = vpop.f32.mrf.mxu0 }
 0x17a   :  { %v840_v62 = vpack.c.bf16 %v668_v13, %v665_v59 }
 0x17b   :  { %v670_v20 = vpop.f32.mrf.mxu0 }
 0x17c   :  { %3613 = vmatmul.mubr.msk.bf16.vlgmr.msra.gmra.mxu1 %vm867_vm1, %v825_v5 }
 0x17d   :  { %v673_v27 = vpop.f32.mrf.mxu0  ;;  %3616 = vmatprep.mubr.msk.bf16.mxu1 %vm867_vm1, %v826_v12  ;;  %3621 = vmatpush3.bf16.msra.mxu1 %v1044_v16  ;;  %v1124_v12 = vsel %vm880_vm0, %v862_v25, 0 }
 0x17e   :  { %3801 = vmatprep.subr.msk.bf16.mxu1 %vm880_vm0, %v862_v25  ;;  %v1534_v25 = vld [vmem:[#allocation4 + $0x10] sm:$0x3] }
 0x17f   :  { %v675_v57 = vpop.f32.mrf.mxu0 }
 0x181   :  { %v676_v60 = vpop.f32.mrf.mxu0 }
 0x182   :  { %v841_v8 = vpack.c.bf16 %v676_v60, %v673_v27 }
 0x183   :  { %v678_v28 = vpop.f32.mrf.mxu0 }
 0x184   :  { %3617 = vmatmul.mubr.msk.bf16.gmra.mxu1 %vm867_vm1, %v827_v19 }
 0x185   :  { %v681_v1 = vpop.f32.mrf.mxu0  ;;  %3622 = vmatprep.mubr.msk.bf16.mxu1 %vm867_vm1, %v840_v62 }
 0x187   :  { %v683_v3 = vpop.f32.mrf.mxu0 }
 0x189   :  { %v684_v5 = vpop.f32.mrf.mxu0 }
 0x18a   :  { %v842_v10 = vpack.c.bf16 %v684_v5, %v681_v1 }
 0x18b   :  { %v686_v30 = vpop.f32.mrf.mxu0 }
 0x18c   :  { %3623 = vmatmul.mubr.msk.bf16.vlgmr.msra.gmra.mxu1 %vm867_vm1, %v841_v8  ;;  %v1548_v30 = vsel %vm880_vm0, %v1534_v25, 0 }
 0x18d   :  { %v689_v34 = vpop.f32.mrf.mxu0  ;;  %3626 = vmatprep.mubr.msk.bf16.mxu1 %vm867_vm1, %v842_v10  ;;  %3631 = vmatpush3.bf16.msra.mxu1 %v1124_v12 }
 0x18e   :  { %3802 = vmatprep.subr.msk.bf16.mxu1 %vm880_vm0, %v1192_v32 }
 0x18f   :  { %v691_v15 = vpop.f32.mrf.mxu0 }
 0x191   :  { %v692_v17 = vpop.f32.mrf.mxu0 }
 0x192   :  { %v843_v19 = vpack.c.bf16 %v692_v17, %v689_v34 }
 0x193   :  { %v694_v35 = vpop.f32.mrf.mxu0 }
 0x194   :  { %3627 = vmatmul.mubr.msk.bf16.gmra.mxu1 %vm867_vm1, %v843_v19 }
 0x195   :  { %v697_v37 = vpop.f32.mrf.mxu0  ;;  %3632 = vmatprep.mubr.msk.bf16.mxu1 %vm867_vm1, %v828_v26 }
 0x197   :  { %v699_v39 = vpop.f32.mrf.mxu0 }
 0x199   :  { %v700_v41 = vpop.f32.mrf.mxu0 }
 0x19a   :  { %v844_v26 = vpack.c.bf16 %v700_v41, %v697_v37 }
 0x19b   :  { %v702_v44 = vpop.f32.mrf.mxu0 }
 0x19c   :  { %3633 = vmatmul.mubr.msk.bf16.vlgmr.msra.gmra.mxu1 %vm867_vm1, %v829_v33 }
 0x19d   :  { %v705_v48 = vpop.f32.mrf.mxu0  ;;  %3636 = vmatprep.mubr.msk.bf16.mxu1 %vm867_vm1, %v830_v40  ;;  %3641 = vmatpush3.bf16.msra.mxu1 %v1206_v42  ;;  %v1286_v40 = vsel %vm880_vm0, %v864_v46, 0 }
 0x19e   :  { %3803 = vmatprep.subr.msk.bf16.mxu1 %vm880_vm0, %v864_v46 }
 0x19f   :  { %v707_v22 = vpop.f32.mrf.mxu0 }
 0x1a1   :  { %v708_v24 = vpop.f32.mrf.mxu0 }
 0x1a2   :  { %v845_v36 = vpack.c.bf16 %v708_v24, %v705_v48 }
 0x1a3   :  { %v710_v49 = vpop.f32.mrf.mxu0 }
 0x1a4   :  { %3637 = vmatmul.mubr.msk.bf16.gmra.mxu1 %vm867_vm1, %v831_v47 }
 0x1a5   :  { %v713_v29 = vpop.f32.mrf.mxu0  ;;  %3642 = vmatprep.mubr.msk.bf16.mxu1 %vm867_vm1, %v844_v26 }
 0x1a7   :  { %v715_v31 = vpop.f32.mrf.mxu0 }
 0x1a9   :  { %v716_v33 = vpop.f32.mrf.mxu0 }
 0x1aa   :  { %v846_v38 = vpack.c.bf16 %v716_v33, %v713_v29 }
 0x1ab   :  { %v718_v51 = vpop.f32.mrf.mxu0 }
 0x1ac   :  { %3643 = vmatmul.mubr.msk.bf16.vlgmr.msra.gmra.mxu1 %vm867_vm1, %v845_v36 }
 0x1ad   :  { %v721_v55 = vpop.f32.mrf.mxu0  ;;  %3646 = vmatprep.mubr.msk.bf16.mxu1 %vm867_vm1, %v846_v38  ;;  %3651 = vmatpush3.bf16.msra.mxu1 %v1286_v40 }
 0x1ae   :  { %3804 = vmatprep.subr.msk.bf16.mxu1 %vm880_vm0, %v1354_v53 }
 0x1af   :  { %v723_v43 = vpop.f32.mrf.mxu0 }
 0x1b1   :  { %v724_v45 = vpop.f32.mrf.mxu0 }
 0x1b2   :  { %v847_v47 = vpack.c.bf16 %v724_v45, %v721_v55 }
 0x1b3   :  { %v726_v56 = vpop.f32.mrf.mxu0 }
 0x1b4   :  { %3647 = vmatmul.mubr.msk.bf16.gmra.mxu1 %vm867_vm1, %v847_v47 }
 0x1b5   :  { %v729_v61 = vpop.f32.mrf.mxu0  ;;  %3652 = vmatprep.mubr.msk.bf16.mxu1 %vm867_vm1, %v832_v54 }
 0x1b7   :  { %v731_v0 = vpop.f32.mrf.mxu0 }
 0x1b9   :  { %v732_v4 = vpop.f32.mrf.mxu0 }
 0x1ba   :  { %v848_v54 = vpack.c.bf16 %v732_v4, %v729_v61 }
 0x1bb   :  { %v734_v59 = vpop.f32.mrf.mxu0 }
 0x1bc   :  { %3653 = vmatmul.mubr.msk.bf16.vlgmr.msra.gmra.mxu1 %vm867_vm1, %v833_v2 }
 0x1bd   :  { %v737_v13 = vpop.f32.mrf.mxu0  ;;  %3656 = vmatprep.mubr.msk.bf16.mxu1 %vm867_vm1, %v834_v14  ;;  %3661 = vmatpush3.bf16.msra.mxu1 %v1368_v6  ;;  %v1458_v14 = vsel %vm880_vm0, %v1444_v9, 0 }
 0x1be   :  { %3805 = vmatprep.subr.msk.bf16.mxu1 %vm880_vm0, %v1444_v9 }
 0x1bf   :  { %v739_v50 = vpop.f32.mrf.mxu0 }
 0x1c1   :  { %v740_v52 = vpop.f32.mrf.mxu0 }
 0x1c2   :  { %v849_v7 = vpack.c.bf16 %v740_v52, %v737_v13 }
 0x1c3   :  { %v742_v16 = vpop.f32.mrf.mxu0 }
 0x1c4   :  { %3657 = vmatmul.mubr.msk.bf16.gmra.mxu1 %vm867_vm1, %v835_v23 }
 0x1c5   :  { %v745_v58 = vpop.f32.mrf.mxu0  ;;  %3662 = vmatprep.mubr.msk.bf16.mxu1 %vm867_vm1, %v848_v54 }
 0x1c7   :  { %v747_v63 = vpop.f32.mrf.mxu0 }
 0x1c9   :  { %v748_v2 = vpop.f32.mrf.mxu0 }
 0x1ca   :  { %v850_v11 = vpack.c.bf16 %v748_v2, %v745_v58 }
 0x1cb   :  { %v750_v20 = vpop.f32.mrf.mxu0 }
 0x1cc   :  { %3663 = vmatmul.mubr.msk.bf16.vlgmr.msra.gmra.mxu1 %vm867_vm1, %v849_v7 }
 0x1cd   :  { %v753_v27 = vpop.f32.mrf.mxu0  ;;  %3666 = vmatprep.mubr.msk.bf16.mxu1 %vm867_vm1, %v850_v11  ;;  %3671 = vmatpush3.bf16.msra.mxu1 %v1458_v14 }
 0x1ce   :  { %3806 = vmatprep.subr.msk.bf16.mxu1 %vm880_vm0, %v1534_v25 }
 0x1cf   :  { %v755_v18 = vpop.f32.mrf.mxu0 }
 0x1d1   :  { %v756_v21 = vpop.f32.mrf.mxu0 }
 0x1d2   :  { %v851_v23 = vpack.c.bf16 %v756_v21, %v753_v27 }
 0x1d3   :  { %v758_v57 = vpop.f32.mrf.mxu0 }
 0x1d4   :  { %3667 = vmatmul.mubr.msk.bf16.gmra.mxu1 %vm867_vm1, %v851_v23 }
 0x1d5   :  { %v761_v60 = vpop.f32.mrf.mxu0 }
 0x1d7   :  { %v763_v62 = vpop.f32.mrf.mxu0 }
 0x1d9   :  { %v764_v28 = vpop.f32.mrf.mxu0 }
 0x1da   :  { %v852_v1 = vpack.c.bf16 %v764_v28, %v761_v60 }
 0x1db   :  { %v766_v3 = vpop.f32.mrf.mxu0 }
 0x1dc   :  { %3672 = vmatprep.mubr.msk.bf16.mxu1 %vm867_vm1, %v852_v1 }
 0x1dd   :  { %v769_v5 = vpop.f32.mrf.mxu0 }
 0x1df   :  { %v771_v8 = vpop.f32.mrf.mxu0 }
 0x1e1   :  { %v772_v10 = vpop.f32.mrf.mxu0 }
 0x1e2   :  { %v853_v12 = vpack.c.bf16 %v772_v10, %v769_v5 }
 0x1e3   :  { %v774_v32 = vpop.f32.mrf.mxu0 }
 0x1e4   :  { %3673 = vmatmul.mubr.msk.bf16.vlgmr.msra.gmra.mxu1 %vm867_vm1, %v853_v12 }
 0x1e5   :  { %v777_v34 = vpop.f32.mrf.mxu0  ;;  %3681 = vmatpush3.bf16.msra.mxu1 %v1548_v30 }
 0x1e7   :  { %v779_v15 = vpop.f32.mrf.mxu0 }
 0x1e9   :  { %v780_v17 = vpop.f32.mrf.mxu0 }
 0x1ea   :  { %v854_v19 = vpack.c.bf16 %v780_v17, %v777_v34 }
 0x1eb   :  { %v782_v35 = vpop.f32.mrf.mxu0 }
 0x1ec   :  { %3676 = vmatprep.mubr.msk.bf16.mxu1 %vm867_vm1, %v854_v19 }
 0x1ed   :  { %v785_v37 = vpop.f32.mrf.mxu0 }
 0x1ef   :  { %v787_v39 = vpop.f32.mrf.mxu0 }
 0x1f1   :  { %v788_v41 = vpop.f32.mrf.mxu0 }
 0x1f2   :  { %v855_v42 = vpack.c.bf16 %v788_v41, %v785_v37  ;;  %v4127_v41 = vmov 0.0  }
 0x1f3   :  { %v790_v44 = vpop.f32.mrf.mxu0  ;;  %3690 = vmatprep.subr.bf16.mxu1 %v4127_v41 }
 0x1f4   :  { %3677 = vmatmul.mubr.msk.bf16.gmra.mxu1 %vm867_vm1, %v855_v42 }
 0x1f5   :  { %v793_v46 = vpop.f32.mrf.mxu0 }
 0x1f7   :  { %v795_v48 = vpop.f32.mrf.mxu0 }
 0x1f9   :  { %v796_v22 = vpop.f32.mrf.mxu0 }
 0x1fa   :  { %v856_v24 = vpack.c.bf16 %v796_v22, %v793_v46 }
 0x1fb   :  { %v798_v26 = vpop.f32.mrf.mxu0 }
 0x1fc   :  { %3682 = vmatprep.mubr.msk.bf16.mxu1 %vm867_vm1, %v856_v24 }
 0x1fd   :  { %v801_v49 = vpop.f32.mrf.mxu0 }
 0x1ff   :  { %v803_v29 = vpop.f32.mrf.mxu0 }
 0x201   :  { %v804_v31 = vpop.f32.mrf.mxu0 }
 0x202   :  { %v857_v33 = vpack.c.bf16 %v804_v31, %v801_v49 }
 0x203   :  { %v806_v36 = vpop.f32.mrf.mxu0 }
 0x204   :  { %3683 = vmatmul.mubr.msk.bf16.vlgmr.msra.gmra.mxu1 %vm867_vm1, %v857_v33 }
 0x205   :  { %v809_v38 = vpop.f32.mrf.mxu0 }
 0x207   :  { %v811_v40 = vpop.f32.mrf.mxu0 }
 0x209   :  { %v812_v51 = vpop.f32.mrf.mxu0 }
 0x20a   :  { %v858_v53 = vpack.c.bf16 %v812_v51, %v809_v38 }
 0x20b   :  { %v814_v55 = vpop.f32.mrf.mxu0 }
 0x20c   :  { %3686 = vmatprep.mubr.msk.bf16.mxu1 %vm867_vm1, %v858_v53 }
 0x20d   :  { %v817_v43 = vpop.f32.mrf.mxu0 }
 0x20f   :  { %v819_v45 = vpop.f32.mrf.mxu0 }
 0x211   :  { %v820_v47 = vpop.f32.mrf.mxu0 }
 0x212   :  { %v859_v56 = vpack.c.bf16 %v820_v47, %v817_v43 }
 0x213   :  { %v822_v61 = vpop.f32.mrf.mxu0 }
 0x214   :  { %3687 = vmatmul.mubr.msk.bf16.gmra.mxu1 %vm867_vm1, %v859_v56 }
 0x215   :  { %3698 = vmatprep.mubr.msk.bf16.mxu1 %vm4128_vm2, %v4127_v41 }
 0x224   :  { %v3604_v0 = vpop.f32.mrf.mxu1 }
 0x226   :  { %v918_v4 = vpop.f32.mrf.mxu1 }
 0x228   :  { %v3605_v6 = vpop.f32.mrf.mxu1 }
 0x22a   :  { %v4342_v59 = vpop.f32.mrf.mxu1 }
 0x234   :  { %v3608_v9 = vpop.f32.mrf.mxu1 }
 0x236   :  { %v934_v13 = vpop.f32.mrf.mxu1 }
 0x238   :  { %v3609_v50 = vpop.f32.mrf.mxu1 }
 0x23a   :  { %v4344_v52 = vpop.f32.mrf.mxu1 }
 0x23c   :  { %v3614_v54 = vpop.f32.mrf.mxu1 }
 0x23d   :  { %v4346_v16 = vadd.f32 %v3614_v54, %v3604_v0 }
 0x23e   :  { %v998_v58 = vpop.f32.mrf.mxu1 }
 0x23f   :  { %v4348_v63 = vadd.f32 %v998_v58, %v918_v4  ;;  %v3929_v4 = vld [vmem:[#allocation6 + $0x1f8] sm:$0xff]  }
 0x240   :  { %v3615_v2 = vpop.f32.mrf.mxu1  ;;  %3557 = vmatprep.subr.bf16.mxu0 %v3929_v4 }
 0x241   :  { %v4350_v7 = vadd.f32 %v3615_v2, %v3605_v6  ;;  %v3930_v6 = vld [vmem:[#allocation6 + $0x1b8] sm:$0xff]  }
 0x242   :  { %v4352_v11 = vpop.f32.mrf.mxu1  ;;  %3558 = vmatpush3.bf16.msra.mxu0 %v3930_v6  ;;  %v3940_v6 = vld [vmem:[#allocation6 + $0x1a8] sm:$0xff]  }
 0x244   :  { %v3618_v14 = vpop.f32.mrf.mxu1 }
 0x245   :  { %v4354_v20 = vadd.f32 %v3618_v14, %v3608_v9 }
 0x246   :  { %v1014_v25 = vpop.f32.mrf.mxu1 }
 0x247   :  { %v4356_v27 = vadd.f32 %v1014_v25, %v934_v13 }
 0x248   :  { %v3619_v18 = vpop.f32.mrf.mxu1 }
 0x249   :  { %v4358_v21 = vadd.f32 %v3619_v18, %v3609_v50 }
 0x24a   :  { %v4360_v23 = vpop.f32.mrf.mxu1 }
 0x24c   :  { %v3624_v57 = vpop.f32.mrf.mxu1 }
 0x24e   :  { %v1080_v60 = vpop.f32.mrf.mxu1 }
 0x250   :  { %v3625_v62 = vpop.f32.mrf.mxu1 }
 0x252   :  { %v4362_v28 = vpop.f32.mrf.mxu1 }
 0x254   :  { %v3628_v1 = vpop.f32.mrf.mxu1 }
 0x256   :  { %v1096_v3 = vpop.f32.mrf.mxu1 }
 0x258   :  { %v3629_v5 = vpop.f32.mrf.mxu1 }
 0x25a   :  { %v4364_v8 = vpop.f32.mrf.mxu1 }
 0x25c   :  { %v3634_v10 = vpop.f32.mrf.mxu1 }
 0x25d   :  { %v1169_v12 = vadd.f32 %v3634_v10, %v3624_v57 }
 0x25e   :  { %v1160_v30 = vpop.f32.mrf.mxu1 }
 0x25f   :  { %v1161_v32 = vadd.f32 %v1160_v30, %v1080_v60  ;;  %v3934_v60 = vld [vmem:[#allocation6 + $0x1f0] sm:$0xff]  }
 0x260   :  { %v3635_v34 = vpop.f32.mrf.mxu1  ;;  %3559 = vmatprep.subr.bf16.mxu0 %v3934_v60 }
 0x261   :  { %v1172_v15 = vadd.f32 %v3635_v34, %v3625_v62  ;;  %v3935_v62 = vld [vmem:[#allocation6 + $0x1b0] sm:$0xff]  }
 0x262   :  { %v4366_v17 = vpop.f32.mrf.mxu1  ;;  %3560 = vmatpush3.bf16.msra.mxu0 %v3935_v62 }
 0x264   :  { %v3638_v19 = vpop.f32.mrf.mxu1 }
 0x265   :  { %v1185_v35 = vadd.f32 %v3638_v19, %v3628_v1 }
 0x266   :  { %v1176_v37 = vpop.f32.mrf.mxu1 }
 0x267   :  { %v1177_v39 = vadd.f32 %v1176_v37, %v1096_v3 }
 0x268   :  { %v3639_v42 = vpop.f32.mrf.mxu1 }
 0x269   :  { %v1188_v44 = vadd.f32 %v3639_v42, %v3629_v5 }
 0x26a   :  { %v4369_v46 = vpop.f32.mrf.mxu1 }
 0x26c   :  { %v3644_v48 = vpop.f32.mrf.mxu1 }
 0x26e   :  { %v1242_v22 = vpop.f32.mrf.mxu1 }
 0x270   :  { %v4371_v24 = vpop.f32.mrf.mxu1 }
 0x272   :  { %v1245_v26 = vpop.f32.mrf.mxu1 }
 0x274   :  { %v4373_v49 = vpop.f32.mrf.mxu1 }
 0x276   :  { %v4375_v29 = vpop.f32.mrf.mxu1 }
 0x278   :  { %v4377_v31 = vpop.f32.mrf.mxu1 }
 0x27a   :  { %v4379_v33 = vpop.f32.mrf.mxu1 }
 0x27c   :  { %v3654_v36 = vpop.f32.mrf.mxu1 }
 0x27d   :  { %v1331_v38 = vadd.f32 %v3654_v36, %v3644_v48 }
 0x27e   :  { %v1322_v40 = vpop.f32.mrf.mxu1 }
 0x27f   :  { %v4381_v51 = vadd.f32 %v1322_v40, %v1242_v22 }
 0x280   :  { %v3655_v53 = vpop.f32.mrf.mxu1 }
 0x282   :  { %v1325_v55 = vpop.f32.mrf.mxu1 }
 0x283   :  { %v4383_v43 = vadd.f32 %v1325_v55, %v1245_v26 }
 0x284   :  { %v4387_v45 = vpop.f32.mrf.mxu1 }
 0x286   :  { %v4389_v47 = vpop.f32.mrf.mxu1 }
 0x288   :  { %v4391_v56 = vpop.f32.mrf.mxu1 }
 0x28a   :  { %v4393_v61 = vpop.f32.mrf.mxu1 }
 0x28c   :  { %v3664_v0 = vpop.f32.mrf.mxu1 }
 0x28d   :  { %v1437_v18 = vadd.f32 %v3664_v0, %v4346_v16 }
 0x28e   :  { %v1404_v9 = vpop.f32.mrf.mxu1 }
 0x28f   :  { %v1435_v3 = vadd.f32 %v1404_v9, %v4348_v63  ;;  %v3942_v9 = vld [vmem:[#allocation6 + $0x1e0] sm:$0xff]  }
 0x290   :  { %v3665_v13 = vpop.f32.mrf.mxu1 }
 0x291   :  { %v1438_v34 = vadd.f32 %v3665_v13, %v4350_v7  ;;  %v3943_v13 = vld [vmem:[#allocation6 + $0x1a0] sm:$0xff]  }
 0x292   :  { %v4395_v50 = vpop.f32.mrf.mxu1 }
 0x294   :  { %v3668_v54 = vpop.f32.mrf.mxu1 }
 0x295   :  { %v1441_v16 = vadd.f32 %v3668_v54, %v4354_v20  ;;  %v1334_v54 = vadd.f32 %v3655_v53, %v4371_v24  ;;  %v1002_v24 = vadd.f32 %v4352_v11, %v4342_v59 }
 0x296   :  { %v1420_v58 = vpop.f32.mrf.mxu1 }
 0x297   :  { %v1439_v36 = vadd.f32 %v1420_v58, %v4356_v27  ;;  %v4414_v27 = vld [vmem:[%s4576_s5] ss:$0 sm:$0xff] }
 0x298   :  { %v3669_v2 = vpop.f32.mrf.mxu1 }
 0x299   :  { %v1442_v55 = vadd.f32 %v3669_v2, %v4358_v21  ;;  %v3948_v2 = vld [vmem:[#allocation6 + $0x1d8] sm:$0xff]  }
 0x29a   :  { %v4397_v14 = vpop.f32.mrf.mxu1 }
 0x2a4   :  { %v3674_v25 = vpop.f32.mrf.mxu1 }
 0x2a5   :  { %v1527_v57 = vadd.f32 %v3674_v25, %v1169_v12  ;;  %v1164_v25 = vadd.f32 %v4366_v17, %v4362_v28  ;;  %v1436_v17 = vadd.f32 %v4395_v50, %v1002_v24  ;;  %v1347_v50 = vadd.f32 %v4387_v45, %v4373_v49 }
 0x2a6   :  { %v1494_v1 = vpop.f32.mrf.mxu1 }
 0x2a7   :  { %v1625_v5 = vadd.f32 %v1527_v57, %v1437_v18  ;;  %v1525_v10 = vadd.f32 %v1494_v1, %v1161_v32  ;;  %v3950_v57 = vld [vmem:[#allocation6 + $0x198] sm:$0xff]  }
 0x2a8   :  { %v3675_v30 = vpop.f32.mrf.mxu1 }
 0x2a9   :  { %v1623_v19 = vadd.f32 %v1525_v10, %v1435_v3  ;;  %v1528_v37 = vadd.f32 %v3675_v30, %v1172_v15  ;;  %v3939_v15 = vld [vmem:[#allocation6 + $0x1e8] sm:$0xff]  }
 0x2aa   :  { %v1497_v48 = vpop.f32.mrf.mxu1  ;;  %3561 = vmatprep.subr.bf16.mxu0 %v3939_v15 }
 0x2ab   :  { %v1626_v42 = vadd.f32 %v1528_v37, %v1438_v34  ;;  %3562 = vmatpush3.bf16.msra.mxu0 %v3940_v6  ;;  %v1526_v53 = vadd.f32 %v1497_v48, %v1164_v25 }
 0x2ac   :  { %3563 = vmatprep.subr.bf16.mxu0 %v3942_v9 }
 0x2ad   :  { %v1624_v37 = vadd.f32 %v1526_v53, %v1436_v17 }
 0x2af   :  { %3564 = vmatpush3.bf16.msra.mxu0 %v3943_v13 }
 0x2b0   :  { %3565 = vmatprep.subr.bf16.mxu0 %v3948_v2 }
 0x2b3   :  { %3566 = vmatpush3.bf16.msra.mxu0 %v3950_v57 }
 0x2b4   :  { %v3678_v22 = vpop.f32.mrf.mxu1 }
 0x2b5   :  { %v1531_v12 = vadd.f32 %v3678_v22, %v1185_v35 }
 0x2b6   :  { %v1510_v26 = vpop.f32.mrf.mxu1 }
 0x2b7   :  { %v4404_v40 = vadd.f32 %v1531_v12, %v1441_v16  ;;  %v1529_v63 = vadd.f32 %v1510_v26, %v1177_v39  ;;  %v1339_v26 = vadd.f32 %v4389_v47, %v4375_v29  ;;  %v1018_v29 = vadd.f32 %v4360_v23, %v4344_v52 }
 0x2b8   :  { %v3679_v32 = vpop.f32.mrf.mxu1  ;;  %v1342_v47 = vadd.f32 %v4393_v61, %v4379_v33 }
 0x2b9   :  { %v4407_v0 = vadd.f32 %v1529_v63, %v1439_v36  ;;  %v1532_v7 = vadd.f32 %v3679_v32, %v1188_v44  ;;  %v1350_v63 = vadd.f32 %v4391_v56, %v4377_v31 }
 0x2ba   :  { %v1513_v20 = vpop.f32.mrf.mxu1 }
 0x2bb   :  { %v4409_v4 = vadd.f32 %v1532_v7, %v1442_v55  ;;  %v1180_v7 = vadd.f32 %v4369_v46, %v4364_v8  ;;  %v1440_v46 = vadd.f32 %v4397_v14, %v1018_v29  ;;  %v3932_v29 = vld [vmem:[#allocation2 + $0x270] ss:$8 sps:$4 sm:$0xff]  }
 0x2c4   :  { %v3684_v35 = vpop.f32.mrf.mxu1 }
 0x2c5   :  { %v1617_v39 = vadd.f32 %v3684_v35, %v1331_v38  ;;  %v1530_v35 = vadd.f32 %v1513_v20, %v1180_v7  ;;  %v3954_v7 = vld [vmem:[#allocation6 + $0x58] sm:$0xff]  }
 0x2c6   :  { %v1584_v21 = vpop.f32.mrf.mxu1 }
 0x2c7   :  { %v1638_v44 = vadd.f32 %v4414_v27, %v1617_v39  ;;  %v1615_v58 = vadd.f32 %v1584_v21, %v4381_v51 }
 0x2c8   :  { %v3685_v18 = vpop.f32.mrf.mxu1 }
 0x2c9   :  { %v4421_v60 = vadd.f32 %v1638_v44, %v1625_v5  ;;  %v1636_v38 = vadd.f32 %v4414_v27, %v1615_v58  ;;  %v1618_v62 = vadd.f32 %v3685_v18, %v1334_v54  ;;  %v1628_v44 = vadd.f32 %v1530_v35, %v1440_v46  ;;  %v3936_v35 = vld [vmem:[#allocation2 + $0x290] ss:$8 sps:$4 sm:$0xff]   ;;  %v3960_v46 = vld [vmem:[#allocation6 + $0x190] sm:$0xff]  }
 0x2ca   :  { %v1587_v1 = vpop.f32.mrf.mxu1 }
 0x2cb   :  { %v1662_v51 = vmin.f32 %v4421_v60, 0.0  ;;  %v4427_v3 = vadd.f32 %v1636_v38, %v1623_v19  ;;  %v1639_v28 = vadd.f32 %v4414_v27, %v1618_v62  ;;  %v1616_v5 = vadd.f32 %v1587_v1, %v4383_v43 }
 0x2cc   :  { %vm1654_vm3 = vcmp.gt.f32.partialorder %v4421_v60, 0.0 }
 0x2cd   :  { %v1672_v10 = vmul.f32 1.442695, %v1662_v51  ;;  %v1660_v30 = vmin.f32 %v4427_v3, 0.0  ;;  %v1647_v34 = vadd.f32 %v1639_v28, %v1626_v42  ;;  %v1637_v59 = vadd.f32 %v4414_v27, %v1616_v5 }
 0x2ce   :  { %vm1652_vm5 = vcmp.gt.f32.partialorder %v4427_v3, 0.0 }
 0x2cf   :  { %4030 = vpow2.f32 %v1672_v10  ;;  %v1668_v11 = vmul.f32 1.442695, %v1660_v30  ;;  %v1663_v48 = vmin.f32 %v1647_v34, 0.0  ;;  %v1645_v22 = vadd.f32 %v1637_v59, %v1624_v37 }
 0x2d0   :  { %vm1655_vm4 = vcmp.gt.f32.partialorder %v1647_v34, 0.0 }
 0x2d1   :  { %v1674_v19 = vmul.f32 1.442695, %v1663_v48  ;;  %4032 = vpow2.f32 %v1668_v11  ;;  %v1661_v16 = vmin.f32 %v1645_v22, 0.0  ;;  %vm1653_vm6 = vcmp.gt.f32.partialorder %v1645_v22, 0.0 }
 0x2d3   :  { %4034 = vpow2.f32 %v1674_v19  ;;  %v1670_v43 = vmul.f32 1.442695, %v1661_v16  ;;  %v3944_v16 = vld [vmem:[#allocation6 + $0x78] sm:$0xff]  }
 0x2d4   :  { %v3688_v12 = vpop.f32.mrf.mxu1 }
 0x2d5   :  { %v1621_v42 = vadd.f32 %v3688_v12, %v1347_v50  ;;  %4036 = vpow2.f32 %v1670_v43  ;;  %v3927_v50 = vld [vmem:[#allocation2 + $0x240] ss:$8 sps:$4 sm:$0xff]  }
 0x2d6   :  { %v1600_v36 = vpop.f32.mrf.mxu1  ;;  %v3945_v43 = vld [vmem:[#allocation6 + $0x38] sm:$0xff]   ;;  %v3946_v12 = vld [vmem:[#allocation6 + $0x70] sm:$0xff]  }
 0x2d7   :  { %v1642_v32 = vadd.f32 %v4414_v27, %v1621_v42  ;;  %v1619_v55 = vadd.f32 %v1600_v36, %v1339_v26  ;;  %v3947_v26 = vld [vmem:[#allocation6 + $0x30] sm:$0xff]   ;;  %v3949_v42 = vld [vmem:[#allocation6 + $0x68] sm:$0xff]  }
 0x2d8   :  { %v3689_v15 = vpop.f32.mrf.mxu1  ;;  %v3928_v36 = vld [vmem:[#allocation2 + $0x250] ss:$8 sps:$4 sm:$0xff]  }
 0x2d9   :  { %v1650_v49 = vadd.f32 %v1642_v32, %v4404_v40  ;;  %v1640_v45 = vadd.f32 %v4414_v27, %v1619_v55  ;;  %v1622_v6 = vadd.f32 %v3689_v15, %v1350_v63  ;;  %v3951_v63 = vld [vmem:[#allocation6 + $0x28] sm:$0xff]   ;;  %v3952_v32 = vld [vmem:[#allocation6 + $0x60] sm:$0xff]  }
 0x2da   :  { %v1603_v31 = vpop.f32.mrf.mxu1  ;;  %v3953_v55 = vld [vmem:[#allocation6 + $0x20] sm:$0xff]   ;;  %v3931_v15 = vld [vmem:[#allocation2 + $0x260] ss:$8 sps:$4 sm:$0xff]  }
 0x2db   :  { %v1666_v56 = vmin.f32 %v1650_v49, 0.0  ;;  %v1648_v39 = vadd.f32 %v1640_v45, %v4407_v0  ;;  %v1643_v9 = vadd.f32 %v4414_v27, %v1622_v6  ;;  %v1620_v40 = vadd.f32 %v1603_v31, %v1342_v47  ;;  %v3956_v45 = vld [vmem:[#allocation6 + $0x50] sm:$0xff]  }
 0x2dc   :  { %v4031_v8 = vpop.eup %4030  ;;  %vm1658_vm7 = vcmp.gt.f32.partialorder %v1650_v49, 0.0  ;;  %v3957_v6 = vld [vmem:[#allocation6 + $0x10] sm:$0xff]  }
 0x2dd   :  { %v1680_v13 = vmul.f32 1.442695, %v1666_v56  ;;  %v1664_v21 = vmin.f32 %v1648_v39, 0.0  ;;  %v1651_v54 = vadd.f32 %v1643_v9, %v4409_v4  ;;  %v1641_v52 = vadd.f32 %v4414_v27, %v1620_v40  ;;  %v3933_v47 = vld [vmem:[#allocation2 + $0x280] ss:$8 sps:$4 sm:$0xff]  }
 0x2de   :  { %v4033_v23 = vpop.eup %4032  ;;  %v3305_v20 = vadd.f32 -1.0, %v4031_v8  ;;  %vm1656_vm9 = vcmp.gt.f32.partialorder %v1648_v39, 0.0  ;;  %v3937_v31 = vld [vmem:[#allocation2 + $0x2a0] ss:$8 sps:$4 sm:$0xff]   ;;  %v3938_v56 = vld [vmem:[#allocation2 + $0x2b0] ss:$8 sps:$4 sm:$0xff]  }
 0x2df   :  { %4038 = vpow2.f32 %v1680_v13  ;;  %v1676_v33 = vmul.f32 1.442695, %v1664_v21  ;;  %v1667_v61 = vmin.f32 %v1651_v54, 0.0  ;;  %v1649_v0 = vadd.f32 %v1641_v52, %v1628_v44  ;;  %v3958_v9 = vld [vmem:[#allocation6 + $0x1d0] sm:$0xff]   ;;  %v3959_v8 = vld [vmem:[#allocation6 + $0x48] sm:$0xff]   ;;  %v3962_v13 = vld [vmem:[#allocation6 + $0x40] sm:$0xff]  }
 0x2e0   :  { %v4035_v58 = vpop.eup %4034  ;;  %v3303_v18 = vadd.f32 -1.0, %v4033_v23  ;;  %v1694_v4 = vsel %vm1654_vm3, %v4421_v60, %v3305_v20  ;;  %vm1659_vm8 = vcmp.gt.f32.partialorder %v1651_v54, 0.0  ;;  %3567 = vmatprep.subr.bf16.mxu0 %v3958_v9  ;;  %v3961_v40 = vld [vmem:[#allocation6 + $0x8] sm:$0xff]   ;;  %v3963_v21 = vld [vmem:[#allocation6] sm:$0xff]  }
 0x2e1   :  { %v1682_v2 = vmul.f32 1.442695, %v1667_v61  ;;  %v3306_v25 = vadd.f32 -1.0, %v4035_v58  ;;  %4040 = vpow2.f32 %v1676_v33  ;;  %v1665_v14 = vmin.f32 %v1649_v0, 0.0  ;;  %3568 = vmatpush3.bf16.msra.mxu0 %v3960_v46  ;;  %v3976_v44 = vld [vmem:[#allocation6 + $0x1c8] sm:$0xff]   ;;  %v3996_v23 = vld [vmem:[#allocation6 + $0x1c0] sm:$0xff]  }
 0x2e2   :  { %v4037_v57 = vpop.eup %4036  ;;  %v1692_v53 = vsel %vm1652_vm5, %v4427_v3, %v3303_v18  ;;  %vm1657_vm10 = vcmp.gt.f32.partialorder %v1649_v0, 0.0  ;;  %v3977_v52 = vld [vmem:[#allocation6 + $0x188] sm:$0xff]   ;;  %3569 = vmatprep.subr.bf16.mxu0 %v3976_v44  ;;  %v3997_v33 = vld [vmem:[#allocation6 + $0x180] sm:$0xff]  }
 0x2e3   :  { %4042 = vpow2.f32 %v1682_v2  ;;  %v1695_v27 = vsel %vm1655_vm4, %v1647_v34, %v3306_v25  ;;  %v1678_v38 = vmul.f32 1.442695, %v1665_v14  ;;  %v3304_v24 = vadd.f32 -1.0, %v4037_v57  ;;  %v3965_v57 = vld [vmem:[#allocation6 + $0xb8] sm:$0xff]   ;;  %v3987_v9 = vld [vmem:[#allocation6 + $0x128] sm:$0xff]  }
 0x2e4   :  { %v1701_v62 = vpack.c.bf16 %v1695_v27, %v1694_v4 }
 0x2e5   :  { %4044 = vpow2.f32 %v1678_v38  ;;  %v1693_v1 = vsel %vm1653_vm6, %v1645_v22, %v3304_v24  ;;  %3570 = vmatpush3.bf16.msra.mxu0 %v3977_v52  ;;  %v3966_v38 = vld [vmem:[#allocation6 + $0xf0] sm:$0xff]  }
 0x2e6   :  { %v1700_v51 = vpack.c.bf16 %v1693_v1, %v1692_v53  ;;  %3571 = vmatprep.subr.bf16.mxu0 %v3996_v23  ;;  %v3967_v24 = vld [vmem:[#allocation6 + $0xb0] sm:$0xff]   ;;  %v3968_v53 = vld [vmem:[#allocation6 + $0xe8] sm:$0xff]   ;;  %v3991_v23 = vld [vmem:[#allocation6 + $0x118] sm:$0xff]  }
 0x2e9   :  { %3572 = vmatpush3.bf16.msra.mxu0 %v3997_v33 }
 0x2ea   :  { %3754 = vmatprep.subr.bf16.mxu0 %v4127_v41 }
 0x2ec   :  { %v4039_v28 = vpop.eup %4038 }
 0x2ed   :  { %v3309_v5 = vadd.f32 -1.0, %v4039_v28  ;;  %v3969_v28 = vld [vmem:[#allocation6 + $0xa8] sm:$0xff]  }
 0x2ee   :  { %v4041_v17 = vpop.eup %4040 }
 0x2ef   :  { %v3307_v60 = vadd.f32 -1.0, %v4041_v17  ;;  %v1698_v37 = vsel %vm1658_vm7, %v1650_v49, %v3309_v5  ;;  %v3955_v49 = vld [vmem:[#allocation6 + $0x18] sm:$0xff]   ;;  %v3970_v17 = vld [vmem:[#allocation6 + $0xe0] sm:$0xff]  }
 0x2f0   :  { %v4043_v10 = vpop.eup %4042 }
 0x2f1   :  { %v3310_v30 = vadd.f32 -1.0, %v4043_v10  ;;  %v1696_v19 = vsel %vm1656_vm9, %v1648_v39, %v3307_v60  ;;  %v3941_v39 = vld [vmem:[#allocation2 + $0x2c0] ss:$8 sps:$4 sm:$0xff]  }
 0x2f2   :  { %v4045_v34 = vpop.eup %4044  ;;  %v3972_v60 = vld [vmem:[#allocation6 + $0xd8] sm:$0xff]  }
 0x2f3   :  { %v1699_v59 = vsel %vm1659_vm8, %v1651_v54, %v3310_v30  ;;  %v3308_v48 = vadd.f32 -1.0, %v4045_v34  ;;  %v3964_v54 = vld [vmem:[#allocation6 + $0xf8] sm:$0xff]   ;;  %v3971_v30 = vld [vmem:[#allocation6 + $0xa0] sm:$0xff]  }
 0x2f4   :  { %v1703_v11 = vpack.c.bf16 %v1699_v59, %v1698_v37  ;;  %v3973_v59 = vld [vmem:[#allocation6 + $0x98] sm:$0xff]  }
 0x2f5   :  { %v1697_v3 = vsel %vm1657_vm10, %v1649_v0, %v3308_v48  ;;  %v3974_v48 = vld [vmem:[#allocation6 + $0xd0] sm:$0xff]  }
 0x2f6   :  { %3691 = vmatpush3.bf16.msra.mxu1 %v1703_v11  ;;  %v1702_v22 = vpack.c.bf16 %v1697_v3, %v1696_v19 }
 0x2f7   :  { %3692 = vmatprep.subr.bf16.mxu1 %v4127_v41 }
 0x2fa   :  { %3693 = vmatpush3.bf16.msra.mxu1 %v1702_v22  ;;  %v3975_v22 = vld [vmem:[#allocation6 + $0x90] sm:$0xff]  }
 0x2fb   :  { %3694 = vmatprep.subr.bf16.mxu1 %v4127_v41 }
 0x2fe   :  { %3695 = vmatpush3.bf16.msra.mxu1 %v1701_v62 }
 0x2ff   :  { %3696 = vmatprep.subr.bf16.mxu1 %v4127_v41 }
 0x302   :  { %3697 = vmatpush3.bf16.msra.mxu1 %v1700_v51 }
 0x303   :  { %3491 = vmatprep.subr.bf16.mxu1 %v3944_v16  ;;  %v3978_v16 = vld [vmem:[#allocation6 + $0xc8] sm:$0xff]  }
 0x305   :  { %3699 = vmatmul.mubr.msk.bf16.vlgmr.msra.gmra.mxu1 %vm1767_vm11, %v3927_v50 }
 0x306   :  { %3702 = vmatprep.mubr.msk.bf16.mxu1 %vm4128_vm2, %v4127_v41  ;;  %3492 = vmatpush3.bf16.msra.mxu1 %v3945_v43 }
 0x307   :  { %3493 = vmatprep.subr.bf16.mxu1 %v3946_v12  ;;  %v3979_v12 = vld [vmem:[#allocation6 + $0x88] sm:$0xff]  }
 0x30a   :  { %3494 = vmatpush3.bf16.msra.mxu1 %v3947_v26  ;;  %v3980_v26 = vld [vmem:[#allocation6 + $0xc0] sm:$0xff]  }
 0x30b   :  { %3495 = vmatprep.subr.bf16.mxu1 %v3949_v42 }
 0x30d   :  { %3703 = vmatmul.mubr.msk.bf16.gmra.mxu1 %vm1767_vm11, %v3928_v36 }
 0x30e   :  { %3706 = vmatprep.mubr.msk.bf16.mxu1 %vm4128_vm2, %v4127_v41  ;;  %3496 = vmatpush3.bf16.msra.mxu1 %v3951_v63  ;;  %v3981_v63 = vld [vmem:[#allocation6 + $0x80] sm:$0xff]  }
 0x30f   :  { %3497 = vmatprep.subr.bf16.mxu1 %v3952_v32  ;;  %v3982_v32 = vld [vmem:[#allocation6 + $0x178] sm:$0xff]  }
 0x312   :  { %3498 = vmatpush3.bf16.msra.mxu1 %v3953_v55 }
 0x313   :  { %3499 = vmatprep.subr.bf16.mxu1 %v3954_v7 }
 0x315   :  { %3707 = vmatmul.mubr.msk.bf16.gmra.mxu1 %vm1767_vm11, %v3931_v15  ;;  %v3983_v15 = vld [vmem:[#allocation6 + $0x138] sm:$0xff]  }
 0x316   :  { %3710 = vmatprep.mubr.msk.bf16.mxu1 %vm4128_vm2, %v4127_v41  ;;  %3500 = vmatpush3.bf16.msra.mxu1 %v3955_v49 }
 0x317   :  { %3501 = vmatprep.subr.bf16.mxu1 %v3956_v45 }
 0x31a   :  { %3502 = vmatpush3.bf16.msra.mxu1 %v3957_v6  ;;  %v3984_v6 = vld [vmem:[#allocation6 + $0x170] sm:$0xff]  }
 0x31b   :  { %3503 = vmatprep.subr.bf16.mxu1 %v3959_v8  ;;  %v3988_v8 = vld [vmem:[#allocation6 + $0x160] sm:$0xff]  }
 0x31d   :  { %3711 = vmatmul.mubr.msk.bf16.gmra.mxu1 %vm1767_vm11, %v3932_v29 }
 0x31e   :  { %3714 = vmatprep.mubr.msk.bf16.mxu1 %vm4128_vm2, %v4127_v41  ;;  %3504 = vmatpush3.bf16.msra.mxu1 %v3961_v40 }
 0x31f   :  { %3505 = vmatprep.subr.bf16.mxu1 %v3962_v13  ;;  %v3989_v13 = vld [vmem:[#allocation6 + $0x120] sm:$0xff]  }
 0x322   :  { %3506 = vmatpush3.bf16.msra.mxu1 %v3963_v21  ;;  %v3990_v21 = vld [vmem:[#allocation6 + $0x158] sm:$0xff]  }
 0x323   :  { %3513 = vmatprep.subr.bf16.mxu1 %v3964_v54 }
 0x325   :  { %3715 = vmatmul.mubr.msk.bf16.gmra.mxu1 %vm1767_vm11, %v3933_v47 }
 0x326   :  { %3718 = vmatprep.mubr.msk.bf16.mxu1 %vm4128_vm2, %v4127_v41 }
 0x32d   :  { %3719 = vmatmul.mubr.msk.bf16.gmra.mxu1 %vm1767_vm11, %v3936_v35  ;;  %v3985_v35 = vld [vmem:[#allocation6 + $0x130] sm:$0xff]  }
 0x32e   :  { %3722 = vmatprep.mubr.msk.bf16.mxu1 %vm4128_vm2, %v4127_v41 }
 0x335   :  { %3723 = vmatmul.mubr.msk.bf16.gmra.mxu1 %vm1767_vm11, %v3937_v31  ;;  %v3986_v31 = vld [vmem:[#allocation6 + $0x168] sm:$0xff]  }
 0x336   :  { %3726 = vmatprep.mubr.msk.bf16.mxu1 %vm4128_vm2, %v4127_v41 }
 0x33d   :  { %3727 = vmatmul.mubr.msk.bf16.gmra.mxu1 %vm1767_vm11, %v3938_v56 }
 0x33e   :  { %3730 = vmatprep.mubr.msk.bf16.mxu1 %vm4128_vm2, %v4127_v41 }
 0x345   :  { %3731 = vmatmul.mubr.msk.bf16.gmra.mxu1 %vm1767_vm11, %v3941_v39 }
 0x3c5   :  { %v1829_v61 = vpop.f32.mrf.mxu1 }
 0x3c7   :  { %v3700_v20 = vpop.f32.mrf.mxu1 }
 0x3c9   :  { %v1832_v58 = vpop.f32.mrf.mxu1 }
 0x3ca   :  { %v1900_v4 = vpack.c.bf16 %v1832_v58, %v1829_v61  ;;  %v3992_v61 = vld [vmem:[#allocation6 + $0x150] sm:$0xff]  }
 0x3cb   :  { %v3701_v0 = vpop.f32.mrf.mxu1 }
 0x3cc   :  { %v3993_v0 = vld [vmem:[#allocation6 + $0x110] sm:$0xff]  }
 0x3cd   :  { %v1837_v2 = vpop.f32.mrf.mxu1 }
 0x3cf   :  { %v3704_v25 = vpop.f32.mrf.mxu1 }
 0x3d1   :  { %v1840_v14 = vpop.f32.mrf.mxu1 }
 0x3d2   :  { %v1901_v18 = vpack.c.bf16 %v1840_v14, %v1837_v2  ;;  %v3994_v2 = vld [vmem:[#allocation6 + $0x148] sm:$0xff]  }
 0x3d3   :  { %v3705_v27 = vpop.f32.mrf.mxu1 }
 0x3d4   :  { %2522 = vmatprep.mubr.bf16.mxu1 %v1901_v18  ;;  %v3995_v18 = vld [vmem:[#allocation6 + $0x108] sm:$0xff]   ;;  %v3999_v27 = vld [vmem:[#allocation6 + $0x100] sm:$0xff]  }
 0x3d5   :  { %2523 = vmatmul.mubr.bf16.vlgmr.msra.gmra.mxu1 %v1900_v4  ;;  %v1845_v62 = vpop.f32.mrf.mxu1 }
 0x3d6   :  { %3514 = vmatpush3.bf16.msra.mxu1 %v3965_v57  ;;  %v3998_v57 = vld [vmem:[#allocation6 + $0x140] sm:$0xff]  }
 0x3d7   :  { %3515 = vmatprep.subr.bf16.mxu1 %v3966_v38  ;;  %v3708_v1 = vpop.f32.mrf.mxu1  ;;  %v4000_v38 = vld [vmem:[#allocation6 + $0x238] sm:$0xff]  }
 0x3d8   :  { %v4003_v1 = vld [vmem:[#allocation6 + $0x220] sm:$0xff]  }
 0x3d9   :  { %v1848_v51 = vpop.f32.mrf.mxu1 }
 0x3da   :  { %3516 = vmatpush3.bf16.msra.mxu1 %v3967_v24  ;;  %v1902_v45 = vpack.c.bf16 %v1848_v51, %v1845_v62  ;;  %v4001_v24 = vld [vmem:[#allocation6 + $0x230] sm:$0xff]   ;;  %v4004_v51 = vld [vmem:[#allocation6 + $0x218] sm:$0xff]  }
 0x3db   :  { %3517 = vmatprep.subr.bf16.mxu1 %v3968_v53  ;;  %v3709_v5 = vpop.f32.mrf.mxu1  ;;  %v4002_v53 = vld [vmem:[#allocation6 + $0x228] sm:$0xff]  }
 0x3dc   :  { %v4007_v5 = vld [vmem:[#allocation6 + $0x200] sm:$0xff]  }
 0x3dd   :  { %v1853_v10 = vpop.f32.mrf.mxu1 }
 0x3de   :  { %3518 = vmatpush3.bf16.msra.mxu1 %v3969_v28  ;;  %v4005_v28 = vld [vmem:[#allocation6 + $0x210] sm:$0xff]  }
 0x3df   :  { %3519 = vmatprep.subr.bf16.mxu1 %v3970_v17  ;;  %v3712_v34 = vpop.f32.mrf.mxu1  ;;  %v4006_v17 = vld [vmem:[#allocation6 + $0x208] sm:$0xff]  }
 0x3e1   :  { %v1856_v37 = vpop.f32.mrf.mxu1 }
 0x3e2   :  { %3520 = vmatpush3.bf16.msra.mxu1 %v3971_v30  ;;  %v1903_v11 = vpack.c.bf16 %v1856_v37, %v1853_v10 }
 0x3e3   :  { %3521 = vmatprep.subr.bf16.mxu1 %v3972_v60  ;;  %v3713_v19 = vpop.f32.mrf.mxu1 }
 0x3e4   :  { %2563 = vmatprep.mubr.bf16.mxu1 %v1903_v11 }
 0x3e5   :  { %v4487_v3 = vpop.f32.mrf.mxu1 }
 0x3e6   :  { %3522 = vmatpush3.bf16.msra.mxu1 %v3973_v59 }
 0x3e7   :  { %3523 = vmatprep.subr.bf16.mxu1 %v3974_v48  ;;  %v3716_v50 = vpop.f32.mrf.mxu1 }
 0x3e9   :  { %v4489_v43 = vpop.f32.mrf.mxu1 }
 0x3ea   :  { %3524 = vmatpush3.bf16.msra.mxu1 %v3975_v22  ;;  %v1904_v62 = vpack.c.bf16 %v4489_v43, %v4487_v3  ;;  %v3329_v43 = vld [vmem:[%s4576_s5 + $0x1] ss:$0 sm:$0xff] }
 0x3eb   :  { %3525 = vmatprep.subr.bf16.mxu1 %v3978_v16  ;;  %v3717_v42 = vpop.f32.mrf.mxu1 }
 0x3ed   :  { %v1869_v36 = vpop.f32.mrf.mxu1 }
 0x3ee   :  { %3526 = vmatpush3.bf16.msra.mxu1 %v3979_v12 }
 0x3ef   :  { %3527 = vmatprep.subr.bf16.mxu1 %v3980_v26  ;;  %v3720_v55 = vpop.f32.mrf.mxu1 }
 0x3f1   :  { %v1872_v7 = vpop.f32.mrf.mxu1 }
 0x3f2   :  { %3528 = vmatpush3.bf16.msra.mxu1 %v3981_v63  ;;  %v1905_v49 = vpack.c.bf16 %v1872_v7, %v1869_v36 }
 0x3f3   :  { %3535 = vmatprep.subr.bf16.mxu1 %v3982_v32  ;;  %v3721_v29 = vpop.f32.mrf.mxu1 }
 0x3f5   :  { %2564 = vmatmul.mubr.bf16.vlgmr.msra.gmra.mxu1 %v1902_v45  ;;  %v1877_v47 = vpop.f32.mrf.mxu1 }
 0x3f6   :  { %3536 = vmatpush3.bf16.msra.mxu1 %v3983_v15  ;;  %2604 = vmatprep.mubr.bf16.mxu1 %v1905_v49 }
 0x3f7   :  { %3537 = vmatprep.subr.bf16.mxu1 %v3984_v6  ;;  %v3724_v56 = vpop.f32.mrf.mxu1 }
 0x3f9   :  { %v1880_v39 = vpop.f32.mrf.mxu1 }
 0x3fa   :  { %3538 = vmatpush3.bf16.msra.mxu1 %v3985_v35  ;;  %v1906_v44 = vpack.c.bf16 %v1880_v39, %v1877_v47 }
 0x3fb   :  { %3539 = vmatprep.subr.bf16.mxu1 %v3986_v31  ;;  %v3725_v46 = vpop.f32.mrf.mxu1 }
 0x3fd   :  { %v1885_v40 = vpop.f32.mrf.mxu1 }
 0x3fe   :  { %3540 = vmatpush3.bf16.msra.mxu1 %v3987_v9 }
 0x3ff   :  { %3541 = vmatprep.subr.bf16.mxu1 %v3988_v8  ;;  %v3728_v54 = vpop.f32.mrf.mxu1 }
 0x401   :  { %v1888_v52 = vpop.f32.mrf.mxu1 }
 0x402   :  { %3542 = vmatpush3.bf16.msra.mxu1 %v3989_v13  ;;  %v1907_v33 = vpack.c.bf16 %v1888_v52, %v1885_v40 }
 0x403   :  { %3543 = vmatprep.subr.bf16.mxu1 %v3990_v21  ;;  %v3729_v20 = vpop.f32.mrf.mxu1 }
 0x404   :  { %2645 = vmatprep.mubr.bf16.mxu0 %v1907_v33 }
 0x405   :  { %2646 = vmatmul.mubr.bf16.vlgmr.msra.gmra.mxu0 %v1906_v44  ;;  %v1893_v58 = vpop.f32.mrf.mxu1 }
 0x406   :  { %3544 = vmatpush3.bf16.msra.mxu1 %v3991_v23  ;;  %3756 = vmatprep.mubr.msk.bf16.mxu0 %vm4128_vm2, %v4127_v41 }
 0x407   :  { %3545 = vmatprep.subr.bf16.mxu1 %v3992_v61  ;;  %v3732_v25 = vpop.f32.mrf.mxu1 }
 0x409   :  { %v1896_v14 = vpop.f32.mrf.mxu1 }
 0x40a   :  { %3546 = vmatpush3.bf16.msra.mxu1 %v3993_v0  ;;  %v1908_v10 = vpack.c.bf16 %v1896_v14, %v1893_v58 }
 0x40b   :  { %3547 = vmatprep.subr.bf16.mxu1 %v3994_v2  ;;  %v3733_v4 = vpop.f32.mrf.mxu1 }
 0x40c   :  { %v4009_v4 = vld [vmem:[#allocation2 + $0x2e0] ss:$8 sps:$4 sm:$0xff]  }
 0x40e   :  { %3548 = vmatpush3.bf16.msra.mxu1 %v3995_v18 }
 0x40f   :  { %3549 = vmatprep.subr.bf16.mxu1 %v3998_v57  ;;  %v4008_v57 = vld [vmem:[#allocation2 + $0x2d0] ss:$8 sps:$4 sm:$0xff]  }
 0x412   :  { %3550 = vmatpush3.bf16.msra.mxu1 %v3999_v27  ;;  %v4010_v27 = vld [vmem:[#allocation2 + $0x2f0] ss:$8 sps:$4 sm:$0xff]  }
 0x413   :  { %3734 = vmatprep.subr.bf16.mxu1 %v4127_v41 }
 0x415   :  { %2605 = vmatmul.mubr.bf16.vlgmr.msra.gmra.mxu1 %v1904_v62  ;;  %v4012_v62 = vld [vmem:[#allocation2 + $0x310] ss:$8 sps:$4 sm:$0xff]  }
 0x416   :  { %3735 = vmatpush3.bf16.msra.mxu1 %v4000_v38  ;;  %3750 = vmatprep.mubr.msk.bf16.mxu1 %vm4128_vm2, %v4127_v41  ;;  %v4011_v38 = vld [vmem:[#allocation2 + $0x300] ss:$8 sps:$4 sm:$0xff]  }
 0x417   :  { %3736 = vmatprep.subr.bf16.mxu1 %v4127_v41 }
 0x41a   :  { %3737 = vmatpush3.bf16.msra.mxu1 %v4001_v24  ;;  %v4013_v24 = vld [vmem:[#allocation2 + $0x320] ss:$8 sps:$4 sm:$0xff]  }
 0x41b   :  { %3738 = vmatprep.subr.bf16.mxu1 %v4127_v41 }
 0x41e   :  { %3739 = vmatpush3.bf16.msra.mxu1 %v4002_v53  ;;  %v4014_v53 = vld [vmem:[#allocation2 + $0x330] ss:$8 sps:$4 sm:$0xff]  }
 0x41f   :  { %3740 = vmatprep.subr.bf16.mxu1 %v4127_v41 }
 0x422   :  { %3741 = vmatpush3.bf16.msra.mxu1 %v4003_v1  ;;  %v4015_v1 = vld [vmem:[#allocation2 + $0x340] ss:$8 sps:$4 sm:$0xff]  }
 0x423   :  { %3742 = vmatprep.subr.bf16.mxu1 %v4127_v41 }
 0x426   :  { %3743 = vmatpush3.bf16.msra.mxu1 %v4004_v51  ;;  %v4016_v51 = vld [vmem:[#allocation2 + $0x350] ss:$8 sps:$4 sm:$0xff]  }
 0x427   :  { %3744 = vmatprep.subr.bf16.mxu1 %v4127_v41 }
 0x42a   :  { %3745 = vmatpush3.bf16.msra.mxu1 %v4005_v28  ;;  %v4019_v28 = vld [vmem:[%s4575_s4 + $0x4] ss:$36 sps:$4 sm:$0xff]  }
 0x42b   :  { %3746 = vmatprep.subr.bf16.mxu1 %v4127_v41 }
 0x42e   :  { %3747 = vmatpush3.bf16.msra.mxu1 %v4006_v17 }
 0x42f   :  { %3748 = vmatprep.subr.bf16.mxu1 %v4127_v41 }
 0x432   :  { %3749 = vmatpush3.bf16.msra.mxu1 %v4007_v5 }
 0x435   :  { %3751 = vmatmul.mubr.bf16.vlgmr.msra.gmra.mxu1 %v1908_v10 }
 0x436   :  { %3001 = vmatprep.mubr.bf16.mxu1 %v4019_v28 }
 0x495   :  { %v3507_v30 = vpop.f32.mrf.mxu1 }
 0x497   :  { %v3508_v60 = vpop.f32.mrf.mxu1 }
 0x498   :  { %v3509_v50 = vadd.f32 %v3508_v60, %v3507_v30 }
 0x499   :  { %v3510_v34 = vpop.f32.mrf.mxu1 }
 0x49a   :  { %v2525_v36 = vadd.f32 %v3509_v50, %v3329_v43  ;;  %v4022_v50 = vld [vmem:[%s4575_s4 + $0xc] ss:$36 sps:$4 sm:$0xff]  }
 0x49b   :  { %v3511_v37 = vpop.f32.mrf.mxu1 }
 0x49c   :  { %v3512_v63 = vadd.f32 %v3511_v37, %v3510_v34 }
 0x49e   :  { %v2528_v45 = vadd.f32 %v3512_v63, %v3329_v43 }
 0x4b5   :  { %v3529_v59 = vpop.f32.mrf.mxu1 }
 0x4b7   :  { %v3530_v11 = vpop.f32.mrf.mxu1 }
 0x4b8   :  { %v3531_v42 = vadd.f32 %v3530_v11, %v3529_v59 }
 0x4b9   :  { %v3532_v48 = vpop.f32.mrf.mxu1 }
 0x4ba   :  { %v2566_v15 = vadd.f32 %v3531_v42, %v2525_v36 }
 0x4bb   :  { %v3533_v19 = vpop.f32.mrf.mxu1 }
 0x4bc   :  { %v3534_v49 = vadd.f32 %v3533_v19, %v3532_v48 }
 0x4be   :  { %v2569_v31 = vadd.f32 %v3534_v49, %v2528_v45  ;;  %v4025_v45 = vld [vmem:[%s4575_s4 + $0x14] ss:$36 sps:$4 sm:$0xff]  }
 0x4c5   :  { %v3573_v16 = vpop.f32.mrf.mxu0 }
 0x4c7   :  { %v3574_v26 = vpop.f32.mrf.mxu0 }
 0x4c8   :  { %v3575_v29 = vadd.f32 %v3574_v26, %v3573_v16 }
 0x4c9   :  { %v3576_v7 = vpop.f32.mrf.mxu0 }
 0x4cb   :  { %v3577_v35 = vpop.f32.mrf.mxu0 }
 0x4cc   :  { %v3578_v39 = vadd.f32 %v3577_v35, %v3576_v7 }
 0x4d5   :  { %v3551_v3 = vpop.f32.mrf.mxu1 }
 0x4d7   :  { %v3552_v22 = vpop.f32.mrf.mxu1 }
 0x4d8   :  { %v3553_v32 = vadd.f32 %v3552_v22, %v3551_v3  ;;  %v4017_v22 = vld [vmem:[%s4575_s4] ss:$36 sps:$4 sm:$0xff]  }
 0x4d9   :  { %v3554_v12 = vpop.f32.mrf.mxu1 }
 0x4da   :  { %v2607_v6 = vadd.f32 %v3553_v32, %v2566_v15  ;;  %v4020_v15 = vld [vmem:[%s4575_s4 + $0x8] ss:$36 sps:$4 sm:$0xff]  }
 0x4db   :  { %v3555_v55 = vpop.f32.mrf.mxu1 }
 0x4dc   :  { %v3556_v47 = vadd.f32 %v3555_v55, %v3554_v12  ;;  %v2648_v9 = vadd.f32 %v3575_v29, %v2607_v6 }
 0x4de   :  { %v2610_v56 = vadd.f32 %v3556_v47, %v2569_v31 }
 0x4e0   :  { %v2651_v21 = vadd.f32 %v3578_v39, %v2610_v56 }
 0x4f5   :  { %v2688_v8 = vpop.f32.mrf.mxu1 }
 0x4f6   :  { %v2689_v46 = vadd.f32 %v2688_v8, %v2648_v9 }
 0x4f7   :  { %v3752_v40 = vpop.f32.mrf.mxu1 }
 0x4f8   :  { %v2697_v13 = vmin.f32 %v2689_v46, 0.0  ;;  %vm2695_vm12 = vcmp.gt.f32.partialorder %v2689_v46, 0.0 }
 0x4f9   :  { %v2691_v54 = vpop.f32.mrf.mxu1 }
 0x4fa   :  { %v2699_v44 = vmul.f32 1.442695, %v2697_v13  ;;  %v2692_v52 = vadd.f32 %v2691_v54, %v2651_v21  ;;  %v4028_v13 = vld [vmem:[%s4575_s4 + $0x1c] ss:$36 sps:$4 sm:$0xff]  }
 0x4fb   :  { %v3753_v23 = vpop.f32.mrf.mxu1 }
 0x4fc   :  { %4046 = vpow2.f32 %v2699_v44  ;;  %v2698_v33 = vmin.f32 %v2692_v52, 0.0  ;;  %vm2696_vm13 = vcmp.gt.f32.partialorder %v2692_v52, 0.0 }
 0x4fe   :  { %v2701_v61 = vmul.f32 1.442695, %v2698_v33 }
 0x500   :  { %4048 = vpow2.f32 %v2701_v61 }
 0x509   :  { %v4047_v20 = vpop.eup %4046 }
 0x50a   :  { %v3402_v58 = vadd.f32 -1.0, %v4047_v20 }
 0x50c   :  { %v2705_v25 = vsel %vm2695_vm12, %v2689_v46, %v3402_v58  ;;  %v4023_v46 = vld [vmem:[%s4575_s4 + $0x10] ss:$36 sps:$4 sm:$0xff]  }
 0x50d   :  { %v4049_v0 = vpop.eup %4048 }
 0x50e   :  { %v3403_v2 = vadd.f32 -1.0, %v4049_v0  ;;  %v4026_v0 = vld [vmem:[%s4575_s4 + $0x18] ss:$36 sps:$4 sm:$0xff]  }
 0x510   :  { %v2706_v14 = vsel %vm2696_vm13, %v2692_v52, %v3403_v2 }
 0x511   :  { %v2707_v18 = vpack.c.bf16 %v2706_v14, %v2705_v25 }
 0x513   :  { %3755 = vmatpush3.bf16.msra.mxu0 %v2707_v18  ;;  %v4029_v18 = vld [vmem:[%s4575_s4 + $0x20] ss:$36 sps:$4 sm:$0xff]  }
 0x516   :  { %3757 = vmatmul.mubr.msk.bf16.vlgmr.msra.gmra.mxu0 %vm2771_vm14, %v4008_v57 }
 0x517   :  { %3760 = vmatprep.mubr.msk.bf16.mxu0 %vm4128_vm2, %v4127_v41 }
 0x51e   :  { %3761 = vmatmul.mubr.msk.bf16.gmra.mxu0 %vm2771_vm14, %v4009_v4 }
 0x51f   :  { %3764 = vmatprep.mubr.msk.bf16.mxu0 %vm4128_vm2, %v4127_v41 }
 0x526   :  { %3765 = vmatmul.mubr.msk.bf16.gmra.mxu0 %vm2771_vm14, %v4010_v27 }
 0x527   :  { %3768 = vmatprep.mubr.msk.bf16.mxu0 %vm4128_vm2, %v4127_v41 }
 0x52e   :  { %3769 = vmatmul.mubr.msk.bf16.gmra.mxu0 %vm2771_vm14, %v4011_v38 }
 0x52f   :  { %3772 = vmatprep.mubr.msk.bf16.mxu0 %vm4128_vm2, %v4127_v41 }
 0x536   :  { %3773 = vmatmul.mubr.msk.bf16.gmra.mxu0 %vm2771_vm14, %v4012_v62 }
 0x537   :  { %3776 = vmatprep.mubr.msk.bf16.mxu0 %vm4128_vm2, %v4127_v41 }
 0x53e   :  { %3777 = vmatmul.mubr.msk.bf16.gmra.mxu0 %vm2771_vm14, %v4013_v24 }
 0x53f   :  { %3780 = vmatprep.mubr.msk.bf16.mxu0 %vm4128_vm2, %v4127_v41 }
 0x546   :  { %3781 = vmatmul.mubr.msk.bf16.gmra.mxu0 %vm2771_vm14, %v4014_v53 }
 0x547   :  { %3784 = vmatprep.mubr.msk.bf16.mxu0 %vm4128_vm2, %v4127_v41 }
 0x54e   :  { %3785 = vmatmul.mubr.msk.bf16.gmra.mxu0 %vm2771_vm14, %v4015_v1 }
 0x54f   :  { %3788 = vmatprep.mubr.msk.bf16.mxu0 %vm4128_vm2, %v4127_v41 }
 0x556   :  { %3789 = vmatmul.mubr.msk.bf16.gmra.mxu0 %vm2771_vm14, %v4016_v51 }
 0x5d6   :  { %v2833_v17 = vpop.f32.mrf.mxu0 }
 0x5d8   :  { %v3758_v5 = vpop.f32.mrf.mxu0 }
 0x5da   :  { %v2836_v10 = vpop.f32.mrf.mxu0 }
 0x5db   :  { %v2904_v11 = vpack.c.bf16 %v2836_v10, %v2833_v17 }
 0x5dc   :  { %v3759_v30 = vpop.f32.mrf.mxu0 }
 0x5de   :  { %v2841_v60 = vpop.f32.mrf.mxu0 }
 0x5e0   :  { %v3762_v34 = vpop.f32.mrf.mxu0 }
 0x5e2   :  { %v2844_v37 = vpop.f32.mrf.mxu0 }
 0x5e3   :  { %v2905_v59 = vpack.c.bf16 %v2844_v37, %v2841_v60 }
 0x5e4   :  { %v3763_v48 = vpop.f32.mrf.mxu0 }
 0x5e5   :  { %2983 = vmatprep.subr.bf16.mxu1 %v2905_v59 }
 0x5e6   :  { %v2849_v19 = vpop.f32.mrf.mxu0  ;;  %2984 = vmatpush1.bf16.xpose.msra.mxu1 %v2904_v11 }
 0x5e8   :  { %v3766_v3 = vpop.f32.mrf.mxu0 }
 0x5ea   :  { %v2852_v16 = vpop.f32.mrf.mxu0 }
 0x5eb   :  { %v2906_v63 = vpack.c.bf16 %v2852_v16, %v2849_v19 }
 0x5ec   :  { %v3767_v43 = vpop.f32.mrf.mxu0 }
 0x5ed   :  { %3002 = vmatmul.mubr.bf16.vlgmr.msra.gmra.mxu1 %v4017_v22 }
 0x5ee   :  { %v2857_v12 = vpop.f32.mrf.mxu0  ;;  %3042 = vmatprep.mubr.bf16.mxu1 %v4022_v50 }
 0x5f0   :  { %v3770_v26 = vpop.f32.mrf.mxu0 }
 0x5f2   :  { %v2860_v42 = vpop.f32.mrf.mxu0 }
 0x5f3   :  { %v2907_v36 = vpack.c.bf16 %v2860_v42, %v2857_v12 }
 0x5f4   :  { %v3771_v32 = vpop.f32.mrf.mxu0 }
 0x5f5   :  { %3024 = vmatprep.subr.bf16.mxu1 %v2907_v36 }
 0x5f6   :  { %v2865_v55 = vpop.f32.mrf.mxu0  ;;  %3025 = vmatpush1.bf16.xpose.msra.mxu1 %v2906_v63 }
 0x5f8   :  { %v3774_v7 = vpop.f32.mrf.mxu0 }
 0x5fa   :  { %v2868_v49 = vpop.f32.mrf.mxu0 }
 0x5fb   :  { %v2908_v56 = vpack.c.bf16 %v2868_v49, %v2865_v55 }
 0x5fc   :  { %v3775_v6 = vpop.f32.mrf.mxu0 }
 0x5fd   :  { %3043 = vmatmul.mubr.bf16.vlgmr.msra.gmra.mxu1 %v4020_v15 }
 0x5fe   :  { %v2873_v29 = vpop.f32.mrf.mxu0  ;;  %3083 = vmatprep.mubr.bf16.mxu1 %v4025_v45 }
 0x600   :  { %v3778_v47 = vpop.f32.mrf.mxu0 }
 0x602   :  { %v2876_v35 = vpop.f32.mrf.mxu0 }
 0x603   :  { %v2909_v31 = vpack.c.bf16 %v2876_v35, %v2873_v29 }
 0x604   :  { %v3779_v39 = vpop.f32.mrf.mxu0 }
 0x605   :  { %3065 = vmatprep.subr.bf16.mxu1 %v2909_v31 }
 0x606   :  { %v2881_v9 = vpop.f32.mrf.mxu0  ;;  %3066 = vmatpush1.bf16.xpose.msra.mxu1 %v2908_v56 }
 0x608   :  { %v3782_v8 = vpop.f32.mrf.mxu0 }
 0x60a   :  { %v2884_v40 = vpop.f32.mrf.mxu0 }
 0x60b   :  { %v2910_v33 = vpack.c.bf16 %v2884_v40, %v2881_v9 }
 0x60c   :  { %v3783_v21 = vpop.f32.mrf.mxu0 }
 0x60d   :  { %3084 = vmatmul.mubr.bf16.vlgmr.msra.gmra.mxu1 %v4023_v46 }
 0x60e   :  { %v2889_v54 = vpop.f32.mrf.mxu0  ;;  %3124 = vmatprep.mubr.bf16.mxu1 %v4028_v13 }
 0x610   :  { %v3786_v44 = vpop.f32.mrf.mxu0 }
 0x612   :  { %v2892_v52 = vpop.f32.mrf.mxu0 }
 0x613   :  { %v2911_v23 = vpack.c.bf16 %v2892_v52, %v2889_v54 }
 0x614   :  { %v3787_v61 = vpop.f32.mrf.mxu0 }
 0x615   :  { %3106 = vmatprep.subr.bf16.mxu1 %v2911_v23 }
 0x616   :  { %v2897_v20 = vpop.f32.mrf.mxu0  ;;  %3107 = vmatpush1.bf16.xpose.msra.mxu1 %v2910_v33 }
 0x617   :  { %3792 = vmatprep.subr.bf16.mxu1 %v4127_v41 }
 0x618   :  { %v3790_v58 = vpop.f32.mrf.mxu0 }
 0x61a   :  { %v2900_v2 = vpop.f32.mrf.mxu0 }
 0x61b   :  { %v2912_v25 = vpack.c.bf16 %v2900_v2, %v2897_v20 }
 0x61c   :  { %v3791_v14 = vpop.f32.mrf.mxu0 }
 0x61d   :  { %3125 = vmatmul.mubr.bf16.vlgmr.msra.gmra.mxu1 %v4026_v0 }
 0x61e   :  { %3793 = vmatpush3.bf16.xpose.msra.mxu1 %v2912_v25  ;;  %3794 = vmatprep.mubr.msk.bf16.mxu1 %vm4128_vm2, %v4127_v41 }
 0x625   :  { %3795 = vmatmul.mubr.bf16.vlgmr.msra.gmra.mxu1 %v4029_v18 }
 0x6ad   :  { %v3003_v57 = vpop.f32.mrf.mxu1 }
 0x6af   :  { %v3005_v4 = vpop.f32.mrf.mxu1 }
 0x6b1   :  { %v3006_v27 = vpop.f32.mrf.mxu1 }
 0x6b3   :  { %v3008_v38 = vpop.f32.mrf.mxu1 }
 0x6bd   :  { %v3044_v62 = vpop.f32.mrf.mxu1 }
 0x6be   :  { %v3045_v41 = vadd.f32 %v3044_v62, %v3003_v57 }
 0x6bf   :  { %v3046_v24 = vpop.f32.mrf.mxu1 }
 0x6c1   :  { %v3047_v53 = vpop.f32.mrf.mxu1 }
 0x6c2   :  { %v3048_v59 = vadd.f32 %v3047_v53, %v3006_v27 }
 0x6c3   :  { %v3049_v1 = vpop.f32.mrf.mxu1 }
 0x6cd   :  { %v3085_v51 = vpop.f32.mrf.mxu1 }
 0x6ce   :  { %v3086_v34 = vadd.f32 %v3085_v51, %v3045_v41 }
 0x6cf   :  { %v3087_v28 = vpop.f32.mrf.mxu1 }
 0x6d1   :  { %v3088_v17 = vpop.f32.mrf.mxu1 }
 0x6d2   :  { %v3089_v19 = vadd.f32 %v3088_v17, %v3048_v59 }
 0x6d3   :  { %v3090_v5 = vpop.f32.mrf.mxu1 }
 0x6dd   :  { %v3126_v10 = vpop.f32.mrf.mxu1 }
 0x6de   :  { %v3127_v11 = vadd.f32 %v3126_v10, %v3086_v34 }
 0x6df   :  { %v3128_v30 = vpop.f32.mrf.mxu1 }
 0x6e1   :  { %v3129_v60 = vpop.f32.mrf.mxu1 }
 0x6e2   :  { %v3130_v16 = vadd.f32 %v3129_v60, %v3089_v19 }
 0x6e3   :  { %v3131_v37 = vpop.f32.mrf.mxu1 }
 0x6e5   :  { %v3167_v48 = vpop.f32.mrf.mxu1 }
 0x6e6   :  { %v3168_v3 = vadd.f32 %v3167_v48, %v3127_v11 }
 0x6e7   :  { %v3796_v22 = vpop.f32.mrf.mxu1 }
 0x6e8   :  { %v3176_v50 = vmin.f32 %v3168_v3, 0.0  ;;  %vm3174_vm15 = vcmp.gt.f32.partialorder %v3168_v3, 0.0 }
 0x6e9   :  { %v3170_v43 = vpop.f32.mrf.mxu1 }
 0x6ea   :  { %v3178_v12 = vmul.f32 1.442695, %v3176_v50  ;;  %v3171_v26 = vadd.f32 %v3170_v43, %v3130_v16 }
 0x6eb   :  { %v3797_v42 = vpop.f32.mrf.mxu1 }
 0x6ec   :  { %4050 = vpow2.f32 %v3178_v12  ;;  %v3177_v36 = vmin.f32 %v3171_v26, 0.0  ;;  %vm3175_vm0 = vcmp.gt.f32.partialorder %v3171_v26, 0.0 }
 0x6ee   :  { %v3180_v63 = vmul.f32 1.442695, %v3177_v36 }
 0x6f0   :  { %4052 = vpow2.f32 %v3180_v63 }
 0x6f9   :  { %v4051_v32 = vpop.eup %4050 }
 0x6fa   :  { %v3431_v55 = vadd.f32 -1.0, %v4051_v32 }
 0x6fc   :  { %v3184_v7 = vsel %vm3174_vm15, %v3168_v3, %v3431_v55 }
 0x6fd   :  { %v4053_v15 = vpop.eup %4052  ;;  %3186 = vst.msk [vmem:[%s4577_s6] sm:$0xff] %vm867_vm1, %v3184_v7 }
 0x6fe   :  { %v3432_v49 = vadd.f32 -1.0, %v4053_v15 }
 0x700   :  { %v3185_v45 = vsel %vm3175_vm0, %v3171_v26, %v3432_v49 }
 0x701   :  { %3187 = vst.msk [vmem:[%s4577_s6 + $0x8] sm:$0xff] %vm867_vm1, %v3185_v45 }
 0x702   :  { %3192 = vsyncpa [#allocation3], 1 }
 0x703   :  { %3193 = vsyncpa [#allocation5], 1 }

</bundles_post_ra>
